<compile_context>
chip_gen: v7x
topology: tpu7x:2x2x1
jax: 0.10.0
libtpu: 0.0.40
codegen_flags: <defaults>
</compile_context>

<pallas_src>
import jax
import jax.numpy as jnp
from jax.experimental import pallas as pl
from jax.experimental.pallas import tpu as pltpu

# Logical layer sizes of the PyTorch module (NN1..NN4).
D_IN = 1600            # 40 * 40 * 1 flattened input
D1, D2, D3, D4 = 400, 128, 64, 1
# Lane-padded (multiple-of-128) sizes used inside the kernel.
P1, P2, P3, P4 = 512, 128, 128, 128


def _round_up(x, m):
    return ((x + m - 1) // m) * m


def valuenet_kernel(x_ref,
                    w1_ref, b1_ref,
                    w2_ref, b2_ref,
                    w3_ref, b3_ref,
                    w4_ref, b4_ref,
                    o_ref):
    # x: (tm, 1600) bf16.  bf16 MXU matmuls with f32 accumulation; biases are
    # added in f32 and ReLU is fused in-register (no extra writeback passes).
    x = x_ref[...]
    h = jnp.dot(x, w1_ref[...], preferred_element_type=jnp.float32) + b1_ref[...]
    h = jnp.maximum(h, 0.0).astype(jnp.bfloat16)                     # (tm, 512)
    h = jnp.dot(h, w2_ref[...], preferred_element_type=jnp.float32) + b2_ref[...]
    h = jnp.maximum(h, 0.0).astype(jnp.bfloat16)                     # (tm, 128)
    h = jnp.dot(h, w3_ref[...], preferred_element_type=jnp.float32) + b3_ref[...]
    h = jnp.maximum(h, 0.0).astype(jnp.bfloat16)                     # (tm, 128)
    y = jnp.dot(h, w4_ref[...], preferred_element_type=jnp.float32) + b4_ref[...]
    o_ref[...] = y                                                   # (tm, 128) f32


def _pad2(a, rows, cols):
    return jnp.pad(a, ((0, rows - a.shape[0]), (0, cols - a.shape[1])))


def value_net_forward(x_nchw, params):
    """x_nchw: (B, 1, 40, 40) float32.  params: ((w, b),)*4 with w=(in, out),
    b=(1, out) float32.  Returns (B, 1) float32."""
    B = x_nchw.shape[0]
    (w1, b1), (w2, b2), (w3, b3), (w4, b4) = params

    # Batch tiling: sublane-aligned tile, batch zero-padded to a tile multiple.
    tm = min(512, _round_up(B, 8))
    Bp = _round_up(B, tm)
    grid = (Bp // tm,)

    x_flat = x_nchw.reshape(B, D_IN)
    if Bp != B:
        x_flat = jnp.pad(x_flat, ((0, Bp - B), (0, 0)))
    x_bf16 = x_flat.astype(jnp.bfloat16)

    # Zero-pad feature dims to 128-lane multiples (exact: padded rows/cols
    # contribute 0 through relu) and cast weights to bf16.
    w1p = _pad2(w1, D_IN, P1).astype(jnp.bfloat16)
    b1p = _pad2(b1, 1, P1)
    w2p = _pad2(w2, P1, P2).astype(jnp.bfloat16)
    b2p = _pad2(b2, 1, P2)
    w3p = _pad2(w3, P2, P3).astype(jnp.bfloat16)
    b3p = _pad2(b3, 1, P3)
    w4p = _pad2(w4, P3, P4).astype(jnp.bfloat16)
    b4p = _pad2(b4, 1, P4)

    weights = (w1p, b1p, w2p, b2p, w3p, b3p, w4p, b4p)

    # Constant index_map -> weight/bias blocks stay VMEM-resident across tiles.
    const = lambda a: pl.BlockSpec(a.shape, lambda i: (0, 0))

    flops = 2 * Bp * (D_IN * P1 + P1 * P2 + P2 * P3 + P3 * P4)
    bytes_accessed = (
        x_bf16.size * 2
        + sum(int(w.size) * w.dtype.itemsize for w in weights)
        + Bp * P4 * 4
    )

    out = pl.pallas_call(
        valuenet_kernel,
        out_shape=jax.ShapeDtypeStruct((Bp, P4), jnp.float32),
        grid=grid,
        in_specs=[pl.BlockSpec((tm, D_IN), lambda i: (i, 0))]
                 + [const(a) for a in weights],
        out_specs=pl.BlockSpec((tm, P4), lambda i: (i, 0)),
        compiler_params=pltpu.CompilerParams(
            dimension_semantics=("parallel",)),
        cost_estimate=pl.CostEstimate(flops=flops, transcendentals=0,
                                      bytes_accessed=bytes_accessed),
    )(x_bf16, *weights)

    return out[:B, :D4]


def init_linear(key, in_features, out_features):
    """Deterministic init mimicking torch.nn.Linear (uniform(-1/sqrt(in), 1/sqrt(in)))."""
    kw, kb = jax.random.split(key)
    bound = 1.0 / jnp.sqrt(jnp.float32(in_features))
    w = jax.random.uniform(kw, (in_features, out_features), jnp.float32, -bound, bound)
    b = jax.random.uniform(kb, (1, out_features), jnp.float32, -bound, bound)
    return w, b


if __name__ == "__main__":
    key = jax.random.PRNGKey(0)
    k_in, k1, k2, k3, k4 = jax.random.split(key, 5)

    # Small deterministic input consistent with the module: B=2, NCHW = (2, 1, 40, 40)
    x = jax.random.normal(k_in, (2, 1, 40, 40), jnp.float32)

    params = (
        init_linear(k1, 1600, 400),
        init_linear(k2, 400, 128),
        init_linear(k3, 128, 64),
        init_linear(k4, 64, 1),
    )

    out = jax.block_until_ready(value_net_forward(x, params))

    # Pure-JAX reference with matching bf16 weight/activation precision
    # (f32 accumulation), i.e. the same numerics the kernel implements.
    ref = x.reshape(2, -1).astype(jnp.bfloat16)
    for i, (w, b) in enumerate(params):
        ref = jnp.dot(ref, w.astype(jnp.bfloat16),
                      preferred_element_type=jnp.float32) + b
        if i < 3:
            ref = jnp.maximum(ref, 0.0).astype(jnp.bfloat16)

    assert out.shape == (2, 1)
    assert jnp.allclose(out, ref, atol=5e-3, rtol=5e-3)

    print("KERNEL_OK")
</pallas_src>

<mosaic_0001>
module attributes {stable_mosaic.version = 11 : i64} {
  func.func @valuenet_kernel(%arg0: i32, %arg1: memref<8x1600xbf16, #tpu.memory_space<vmem>>, %arg2: memref<1600x512xbf16, #tpu.memory_space<vmem>>, %arg3: memref<1x512xf32, #tpu.memory_space<vmem>>, %arg4: memref<512x128xbf16, #tpu.memory_space<vmem>>, %arg5: memref<1x128xf32, #tpu.memory_space<vmem>>, %arg6: memref<128x128xbf16, #tpu.memory_space<vmem>>, %arg7: memref<1x128xf32, #tpu.memory_space<vmem>>, %arg8: memref<128x128xbf16, #tpu.memory_space<vmem>>, %arg9: memref<1x128xf32, #tpu.memory_space<vmem>>, %arg10: memref<8x128xf32, #tpu.memory_space<vmem>>) attributes {dimension_semantics = [#tpu.dimension_semantics<parallel>], iteration_bounds = array<i64: 1>, scalar_prefetch = 0 : i64, scratch_operands = 0 : i64, tpu.core_type = #tpu.core_type<tc>, window_params = [{transform_indices = @transform_0, window_bounds = array<i64: 8, 1600>}, {pipeline_mode = #tpu.pipeline_mode<synchronous>, transform_indices = @transform_1, window_bounds = array<i64: 1600, 512>}, {pipeline_mode = #tpu.pipeline_mode<synchronous>, transform_indices = @transform_2, window_bounds = array<i64: 1, 512>}, {pipeline_mode = #tpu.pipeline_mode<synchronous>, transform_indices = @transform_3, window_bounds = array<i64: 512, 128>}, {pipeline_mode = #tpu.pipeline_mode<synchronous>, transform_indices = @transform_4, window_bounds = array<i64: 1, 128>}, {pipeline_mode = #tpu.pipeline_mode<synchronous>, transform_indices = @transform_5, window_bounds = array<i64: 128, 128>}, {pipeline_mode = #tpu.pipeline_mode<synchronous>, transform_indices = @transform_6, window_bounds = array<i64: 1, 128>}, {pipeline_mode = #tpu.pipeline_mode<synchronous>, transform_indices = @transform_7, window_bounds = array<i64: 128, 128>}, {pipeline_mode = #tpu.pipeline_mode<synchronous>, transform_indices = @transform_8, window_bounds = array<i64: 1, 128>}, {transform_indices = @transform_9, window_bounds = array<i64: 8, 128>}]} {
    %c0 = arith.constant 0 : index
    %c0_0 = arith.constant 0 : index
    %0 = vector.load %arg1[%c0, %c0_0] : memref<8x1600xbf16, #tpu.memory_space<vmem>>, vector<8x1600xbf16>
    %c0_1 = arith.constant 0 : index
    %c0_2 = arith.constant 0 : index
    %1 = vector.load %arg2[%c0_1, %c0_2] : memref<1600x512xbf16, #tpu.memory_space<vmem>>, vector<1600x512xbf16>
    %cst = arith.constant dense<0.000000e+00> : vector<8x512xf32>
    %2 = tpu.matmul %0, %1, %cst {dimension_numbers = #tpu.dot_dimension_numbers<[1], [0], [0], [1], [0, 0, 1, 1], [], []>} : vector<8x1600xbf16>, vector<1600x512xbf16>, vector<8x512xf32> -> vector<8x512xf32>
    %c0_3 = arith.constant 0 : index
    %c0_4 = arith.constant 0 : index
    %3 = vector.load %arg3[%c0_3, %c0_4] : memref<1x512xf32, #tpu.memory_space<vmem>>, vector<1x512xf32>
    %4 = vector.broadcast %3 : vector<1x512xf32> to vector<8x512xf32>
    %5 = arith.addf %2, %4 : vector<8x512xf32>
    %cst_5 = arith.constant 0.000000e+00 : f32
    %6 = vector.broadcast %cst_5 : f32 to vector<8x512xf32>
    %7 = arith.maximumf %5, %6 : vector<8x512xf32>
    %8 = arith.truncf %7 : vector<8x512xf32> to vector<8x512xbf16>
    %c0_6 = arith.constant 0 : index
    %c0_7 = arith.constant 0 : index
    %9 = vector.load %arg4[%c0_6, %c0_7] : memref<512x128xbf16, #tpu.memory_space<vmem>>, vector<512x128xbf16>
    %cst_8 = arith.constant dense<0.000000e+00> : vector<8x128xf32>
    %10 = tpu.matmul %8, %9, %cst_8 {dimension_numbers = #tpu.dot_dimension_numbers<[1], [0], [0], [1], [0, 0, 1, 1], [], []>} : vector<8x512xbf16>, vector<512x128xbf16>, vector<8x128xf32> -> vector<8x128xf32>
    %c0_9 = arith.constant 0 : index
    %c0_10 = arith.constant 0 : index
    %11 = vector.load %arg5[%c0_9, %c0_10] : memref<1x128xf32, #tpu.memory_space<vmem>>, vector<1x128xf32>
    %12 = vector.broadcast %11 : vector<1x128xf32> to vector<8x128xf32>
    %13 = arith.addf %10, %12 : vector<8x128xf32>
    %cst_11 = arith.constant 0.000000e+00 : f32
    %14 = vector.broadcast %cst_11 : f32 to vector<8x128xf32>
    %15 = arith.maximumf %13, %14 : vector<8x128xf32>
    %16 = arith.truncf %15 : vector<8x128xf32> to vector<8x128xbf16>
    %c0_12 = arith.constant 0 : index
    %c0_13 = arith.constant 0 : index
    %17 = vector.load %arg6[%c0_12, %c0_13] : memref<128x128xbf16, #tpu.memory_space<vmem>>, vector<128x128xbf16>
    %cst_14 = arith.constant dense<0.000000e+00> : vector<8x128xf32>
    %18 = tpu.matmul %16, %17, %cst_14 {dimension_numbers = #tpu.dot_dimension_numbers<[1], [0], [0], [1], [0, 0, 1, 1], [], []>} : vector<8x128xbf16>, vector<128x128xbf16>, vector<8x128xf32> -> vector<8x128xf32>
    %c0_15 = arith.constant 0 : index
    %c0_16 = arith.constant 0 : index
    %19 = vector.load %arg7[%c0_15, %c0_16] : memref<1x128xf32, #tpu.memory_space<vmem>>, vector<1x128xf32>
    %20 = vector.broadcast %19 : vector<1x128xf32> to vector<8x128xf32>
    %21 = arith.addf %18, %20 : vector<8x128xf32>
    %cst_17 = arith.constant 0.000000e+00 : f32
    %22 = vector.broadcast %cst_17 : f32 to vector<8x128xf32>
    %23 = arith.maximumf %21, %22 : vector<8x128xf32>
    %24 = arith.truncf %23 : vector<8x128xf32> to vector<8x128xbf16>
    %c0_18 = arith.constant 0 : index
    %c0_19 = arith.constant 0 : index
    %25 = vector.load %arg8[%c0_18, %c0_19] : memref<128x128xbf16, #tpu.memory_space<vmem>>, vector<128x128xbf16>
    %cst_20 = arith.constant dense<0.000000e+00> : vector<8x128xf32>
    %26 = tpu.matmul %24, %25, %cst_20 {dimension_numbers = #tpu.dot_dimension_numbers<[1], [0], [0], [1], [0, 0, 1, 1], [], []>} : vector<8x128xbf16>, vector<128x128xbf16>, vector<8x128xf32> -> vector<8x128xf32>
    %c0_21 = arith.constant 0 : index
    %c0_22 = arith.constant 0 : index
    %27 = vector.load %arg9[%c0_21, %c0_22] : memref<1x128xf32, #tpu.memory_space<vmem>>, vector<1x128xf32>
    %28 = vector.broadcast %27 : vector<1x128xf32> to vector<8x128xf32>
    %29 = arith.addf %26, %28 : vector<8x128xf32>
    %c0_23 = arith.constant 0 : index
    %c0_24 = arith.constant 0 : index
    %30 = vector.load %arg10[%c0_23, %c0_24] : memref<8x128xf32, #tpu.memory_space<vmem>>, vector<8x128xf32>
    tpu.vector_store %arg10[%c0_23, %c0_24], %29 {strides = array<i32>} : memref<8x128xf32, #tpu.memory_space<vmem>>, vector<8x128xf32>,
    return
  }
  func.func @transform_0(%arg0: i32) -> (i32, i32) {
    %c0_i32 = arith.constant 0 : i32
    %c0_i32_0 = arith.constant 0 : i32
    return %arg0, %c0_i32 : i32, i32
  }
  func.func @transform_1(%arg0: i32) -> (i32, i32) {
    %c0_i32 = arith.constant 0 : i32
    %c0_i32_0 = arith.constant 0 : i32
    %c0_i32_1 = arith.constant 0 : i32
    return %c0_i32, %c0_i32_0 : i32, i32
  }
  func.func @transform_2(%arg0: i32) -> (i32, i32) {
    %c0_i32 = arith.constant 0 : i32
    %c0_i32_0 = arith.constant 0 : i32
    %c0_i32_1 = arith.constant 0 : i32
    return %c0_i32, %c0_i32_0 : i32, i32
  }
  func.func @transform_3(%arg0: i32) -> (i32, i32) {
    %c0_i32 = arith.constant 0 : i32
    %c0_i32_0 = arith.constant 0 : i32
    %c0_i32_1 = arith.constant 0 : i32
    return %c0_i32, %c0_i32_0 : i32, i32
  }
  func.func @transform_4(%arg0: i32) -> (i32, i32) {
    %c0_i32 = arith.constant 0 : i32
    %c0_i32_0 = arith.constant 0 : i32
    %c0_i32_1 = arith.constant 0 : i32
    return %c0_i32, %c0_i32_0 : i32, i32
  }
  func.func @transform_5(%arg0: i32) -> (i32, i32) {
    %c0_i32 = arith.constant 0 : i32
    %c0_i32_0 = arith.constant 0 : i32
    %c0_i32_1 = arith.constant 0 : i32
    return %c0_i32, %c0_i32_0 : i32, i32
  }
  func.func @transform_6(%arg0: i32) -> (i32, i32) {
    %c0_i32 = arith.constant 0 : i32
    %c0_i32_0 = arith.constant 0 : i32
    %c0_i32_1 = arith.constant 0 : i32
    return %c0_i32, %c0_i32_0 : i32, i32
  }
  func.func @transform_7(%arg0: i32) -> (i32, i32) {
    %c0_i32 = arith.constant 0 : i32
    %c0_i32_0 = arith.constant 0 : i32
    %c0_i32_1 = arith.constant 0 : i32
    return %c0_i32, %c0_i32_0 : i32, i32
  }
  func.func @transform_8(%arg0: i32) -> (i32, i32) {
    %c0_i32 = arith.constant 0 : i32
    %c0_i32_0 = arith.constant 0 : i32
    %c0_i32_1 = arith.constant 0 : i32
    return %c0_i32, %c0_i32_0 : i32, i32
  }
  func.func @transform_9(%arg0: i32) -> (i32, i32) {
    %c0_i32 = arith.constant 0 : i32
    %c0_i32_0 = arith.constant 0 : i32
    return %arg0, %c0_i32 : i32, i32
  }
}

</mosaic_0001>

<bundles_post_ra>
// kernel: tpu_custom_call.1
= control target key start
LH: loop header
LB: loop body
LE: loop exit
PB: predicated region body
PF: predicated region fallthrough
CT: control target
= control target key end

     0   :  { %14 = vsyncpa [#allocation3], 0  ;;  %s5576_s0 = inlined_call_operand.hbm [shape: bf16[8,1600], index: 0, kind: input, shape index: {}]   ;;  %s5577_s1 = inlined_call_operand.hbm [shape: bf16[1600,512], index: 1, kind: input, shape index: {}]   ;;  %s5578_s2 = inlined_call_operand.hbm [shape: f32[1,512], index: 2, kind: input, shape index: {}]   ;;  %s5579_s3 = inlined_call_operand.hbm [shape: bf16[512,128], index: 3, kind: input, shape index: {}]   ;;  %s5580_s4 = inlined_call_operand.hbm [shape: f32[1,128], index: 4, kind: input, shape index: {}]   ;;  %s5581_s5 = inlined_call_operand.hbm [shape: bf16[128,128], index: 5, kind: input, shape index: {}]   ;;  %s5582_s6 = inlined_call_operand.hbm [shape: f32[1,128], index: 6, kind: input, shape index: {}]   ;;  %s5583_s7 = inlined_call_operand.hbm [shape: bf16[128,128], index: 7, kind: input, shape index: {}]   ;;  %s5584_s8 = inlined_call_operand.hbm [shape: f32[1,128], index: 8, kind: input, shape index: {}]   ;;  %s5585_s9 = inlined_call_operand.hbm [shape: f32[8,128], index: 9, kind: output, shape index: {}]  }
   0x1   :  { %15 = vsyncpa [#allocation6], 0 }
   0x2   :  { %16 = vsyncpa [#allocation9], 0 }
   0x3   :  { %17 = vsyncpa [#allocation12], 0 }
   0x4   :  { %18 = vsyncpa [#allocation15], 0 }
   0x5   :  { %19 = vsyncpa [#allocation4], 0  ;;  %s5325_s30 = smov [#allocation5]   ;;  %s5093_s13 = scalar_lea.hbm %s5577_s1, 51200 }
   0x6   :  { %s35_s10 = sshll.u32 %s5325_s30, 4  ;;  %p5094_p0 = scmp.ne.s32.totalorder %s5577_s1, %s5093_s13  ;;  %s36_s10 = int_to_ptr.vmem [resolvable:$true] %s35_s10 }
   0x7   :  { %p5097_p1 = scmp.lt.u32.totalorder %s5093_s13, %s5577_s1 }
   0x9   :  { %p5099_p2 = pnand %p5097_p1, %p5094_p0 }
   0xb   :  { %5102 = shalt.err (!%p5099_p2)
}
   0xc   :  { %s5103_s18 = scalar_lea.vmem %s36_s10, 51200  ;;  %p5108_p4 = scmp.lt.s32.totalorder %s36_s10, %s36_s10 }
   0xd   :  { %p5104_p3 = scmp.ne.s32.totalorder %s36_s10, %s5103_s18  ;;  %p5109_p5 = scmp.lt.s32.totalorder %s5103_s18, %s5103_s18 }
   0xf   :  { %p5110_p6 = por %p5109_p5, %p5108_p4 }
  0x11   :  { %p5111_p7 = pnand %p5110_p6, %p5104_p3 }
  0x13   :  { %5114 = shalt.err (!%p5111_p7)
}
  0x14   :  { %s5326_s19 = smov 256   ;;  %s5327_s20 = smov 16  }
  0x15   :  { %41 = dma.hbm_to_vmem [thread:$0]  %s5577_s1, 51200, %s36_s10, [#allocation6], %s5326_s19, %s5326_s19, %s5327_s20  }
  0x16   :  { %s5328_s23 = smov [#allocation8]   ;;  %s5115_s27 = scalar_lea.hbm %s5579_s3, 4096 }
  0x17   :  { %s57_s24 = sshll.u32 %s5328_s23, 4  ;;  %p5116_p8 = scmp.ne.s32.totalorder %s5579_s3, %s5115_s27  ;;  %s58_s24 = int_to_ptr.vmem [resolvable:$true] %s57_s24 }
  0x18   :  { %p5119_p9 = scmp.lt.u32.totalorder %s5115_s27, %s5579_s3 }
  0x1a   :  { %p5121_p10 = pnand %p5119_p9, %p5116_p8 }
  0x1c   :  { %5124 = shalt.err (!%p5121_p10)
}
  0x1d   :  { %s5125_s12 = scalar_lea.vmem %s58_s24, 4096  ;;  %p5130_p12 = scmp.lt.s32.totalorder %s58_s24, %s58_s24 }
  0x1e   :  { %p5126_p11 = scmp.ne.s32.totalorder %s58_s24, %s5125_s12  ;;  %p5131_p13 = scmp.lt.s32.totalorder %s5125_s12, %s5125_s12 }
  0x20   :  { %p5132_p0 = por %p5131_p13, %p5130_p12 }
  0x22   :  { %p5133_p1 = pnand %p5132_p0, %p5126_p11 }
  0x24   :  { %5136 = shalt.err (!%p5133_p1)
}
  0x25   :  { %s5329_s1 = smov 64   ;;  %s5330_s10 = smov 4  }
  0x26   :  { %63 = dma.hbm_to_vmem [thread:$0]  %s5579_s3, 4096, %s58_s24, [#allocation9], %s5329_s1, %s5329_s1, %s5330_s10  }
  0x27   :  { %s5331_s15 = smov [#allocation11]   ;;  %s5332_s17 = smov [#allocation14]  }
  0x28   :  { %s79_s16 = sshll.u32 %s5331_s15, 4  ;;  %s101_s18 = sshll.u32 %s5332_s17, 4  ;;  %s80_s16 = int_to_ptr.vmem [resolvable:$true] %s79_s16  ;;  %s5419_s18 = int_to_ptr.vmem [resolvable:$true] %s101_s18 }
  0x29   :  { %s5137_s21 = scalar_lea.hbm %s5581_s5, 1024 }
  0x2a   :  { %p5138_p2 = scmp.ne.s32.totalorder %s5581_s5, %s5137_s21  ;;  %p5141_p3 = scmp.lt.u32.totalorder %s5137_s21, %s5581_s5 }
  0x2c   :  { %p5143_p4 = pnand %p5141_p3, %p5138_p2 }
  0x2e   :  { %5146 = shalt.err (!%p5143_p4)
}
  0x2f   :  { %s5147_s3 = scalar_lea.vmem %s80_s16, 1024  ;;  %p5152_p6 = scmp.lt.s32.totalorder %s80_s16, %s80_s16 }
  0x30   :  { %p5148_p5 = scmp.ne.s32.totalorder %s80_s16, %s5147_s3  ;;  %p5153_p7 = scmp.lt.s32.totalorder %s5147_s3, %s5147_s3 }
  0x32   :  { %p5154_p8 = por %p5153_p7, %p5152_p6 }
  0x34   :  { %p5155_p9 = pnand %p5154_p8, %p5148_p5 }
  0x36   :  { %5158 = shalt.err (!%p5155_p9)
}
  0x37   :  { %85 = dma.hbm_to_vmem [thread:$0]  %s5581_s5, 1024, %s80_s16, [#allocation12], %s5329_s1, %s5329_s1, %s5330_s10  }
  0x38   :  { %s5159_s30 = scalar_lea.hbm %s5583_s7, 1024 }
  0x39   :  { %p5160_p10 = scmp.ne.s32.totalorder %s5583_s7, %s5159_s30  ;;  %p5163_p11 = scmp.lt.u32.totalorder %s5159_s30, %s5583_s7 }
  0x3b   :  { %p5165_p12 = pnand %p5163_p11, %p5160_p10 }
  0x3d   :  { %5168 = shalt.err (!%p5165_p12)
}
  0x3e   :  { %s5169_s15 = scalar_lea.vmem %s5419_s18, 1024  ;;  %p5174_p0 = scmp.lt.s32.totalorder %s5419_s18, %s5419_s18 }
  0x3f   :  { %p5170_p13 = scmp.ne.s32.totalorder %s5419_s18, %s5169_s15  ;;  %p5175_p1 = scmp.lt.s32.totalorder %s5169_s15, %s5169_s15 }
  0x41   :  { %p5176_p2 = por %p5175_p1, %p5174_p0 }
  0x43   :  { %p5177_p3 = pnand %p5176_p2, %p5170_p13 }
  0x45   :  { %5180 = shalt.err (!%p5177_p3)
}
  0x46   :  { %107 = dma.hbm_to_vmem [thread:$0]  %s5583_s7, 1024, %s5419_s18, [#allocation15], %s5329_s1, %s5329_s1, %s5330_s10  }
  0x47   :  { %s5333_s17 = smov [#allocation2]   ;;  %s5334_s20 = smov [#allocation7]  }
  0x48   :  { %s26_s19 = sshll.u32 %s5333_s17, 4  ;;  %s48_s21 = sshll.u32 %s5334_s20, 4  ;;  %s27_s19 = int_to_ptr.vmem [resolvable:$true] %s26_s19  ;;  %s49_s21 = int_to_ptr.vmem [resolvable:$true] %s48_s21 }
  0x49   :  { %s5181_s25 = scalar_lea.hbm %s5576_s0, 832 }
  0x4a   :  { %p5182_p4 = scmp.ne.s32.totalorder %s5576_s0, %s5181_s25  ;;  %p5185_p5 = scmp.lt.u32.totalorder %s5181_s25, %s5576_s0 }
  0x4c   :  { %p5187_p6 = pnand %p5185_p5, %p5182_p4 }
  0x4e   :  { %5190 = shalt.err (!%p5187_p6)
}
  0x4f   :  { %s5191_s7 = scalar_lea.vmem %s27_s19, 832  ;;  %p5196_p8 = scmp.lt.s32.totalorder %s27_s19, %s27_s19 }
  0x50   :  { %p5192_p7 = scmp.ne.s32.totalorder %s27_s19, %s5191_s7  ;;  %p5197_p9 = scmp.lt.s32.totalorder %s5191_s7, %s5191_s7 }
  0x52   :  { %p5198_p10 = por %p5197_p9, %p5196_p8 }
  0x54   :  { %p5199_p11 = pnand %p5198_p10, %p5192_p7 }
  0x56   :  { %5202 = shalt.err (!%p5199_p11)
}
  0x57   :  { %29 = dma.hbm_to_vmem [thread:$0]  %s5576_s0, 832, %s27_s19, [#allocation3]  }
  0x58   :  { %s5203_s29 = scalar_lea.hbm %s5578_s2, 64 }
  0x59   :  { %p5204_p12 = scmp.ne.s32.totalorder %s5578_s2, %s5203_s29  ;;  %p5207_p13 = scmp.lt.u32.totalorder %s5203_s29, %s5578_s2 }
  0x5b   :  { %p5209_p0 = pnand %p5207_p13, %p5204_p12 }
  0x5d   :  { %5212 = shalt.err (!%p5209_p0)
}
  0x5e   :  { %s5213_s14 = scalar_lea.vmem %s49_s21, 64  ;;  %p5218_p2 = scmp.lt.s32.totalorder %s49_s21, %s49_s21 }
  0x5f   :  { %p5214_p1 = scmp.ne.s32.totalorder %s49_s21, %s5213_s14  ;;  %p5219_p3 = scmp.lt.s32.totalorder %s5213_s14, %s5213_s14 }
  0x61   :  { %p5220_p4 = por %p5219_p3, %p5218_p2 }
  0x63   :  { %p5221_p5 = pnand %p5220_p4, %p5214_p1 }
  0x65   :  { %5224 = shalt.err (!%p5221_p5)
}
  0x66   :  { %51 = dma.hbm_to_vmem [thread:$0]  %s5578_s2, 64, %s49_s21, [#allocation6]  }
  0x67   :  { %s5335_s5 = smov [#allocation10]   ;;  %s5336_s17 = smov [#allocation13]  }
  0x68   :  { %s70_s16 = sshll.u32 %s5335_s5, 4  ;;  %s92_s19 = sshll.u32 %s5336_s17, 4  ;;  %s71_s16 = int_to_ptr.vmem [resolvable:$true] %s70_s16  ;;  %s93_s19 = int_to_ptr.vmem [resolvable:$true] %s92_s19 }
  0x69   :  { %s5225_s23 = scalar_lea.hbm %s5580_s4, 16 }
  0x6a   :  { %p5226_p6 = scmp.ne.s32.totalorder %s5580_s4, %s5225_s23  ;;  %p5229_p7 = scmp.lt.u32.totalorder %s5225_s23, %s5580_s4 }
  0x6c   :  { %p5231_p8 = pnand %p5229_p7, %p5226_p6 }
  0x6e   :  { %5234 = shalt.err (!%p5231_p8)
}
  0x6f   :  { %s5235_s2 = scalar_lea.vmem %s71_s16, 16  ;;  %s5239_s21 = scalar_lea.vmem %s71_s16, 32 }
  0x70   :  { %p5236_p9 = scmp.ne.s32.totalorder %s71_s16, %s5235_s2  ;;  %p5240_p10 = scmp.lt.s32.totalorder %s71_s16, %s71_s16 }
  0x71   :  { %p5241_p11 = scmp.lt.s32.totalorder %s5239_s21, %s5235_s2 }
  0x73   :  { %p5242_p12 = por %p5241_p11, %p5240_p10 }
  0x75   :  { %p5243_p13 = pnand %p5242_p12, %p5236_p9 }
  0x77   :  { %5246 = shalt.err (!%p5243_p13)
}
  0x78   :  { %73 = dma.hbm_to_vmem [thread:$0]  %s5580_s4, 16, %s71_s16, [#allocation9]  }
  0x79   :  { %s5247_s18 = scalar_lea.hbm %s5582_s6, 16 }
  0x7a   :  { %p5248_p0 = scmp.ne.s32.totalorder %s5582_s6, %s5247_s18  ;;  %p5251_p1 = scmp.lt.u32.totalorder %s5247_s18, %s5582_s6 }
  0x7c   :  { %p5253_p2 = pnand %p5251_p1, %p5248_p0 }
  0x7e   :  { %5256 = shalt.err (!%p5253_p2)
}
  0x7f   :  { %s5257_s12 = scalar_lea.vmem %s93_s19, 16  ;;  %s5261_s13 = scalar_lea.vmem %s93_s19, 32 }
  0x80   :  { %p5258_p3 = scmp.ne.s32.totalorder %s93_s19, %s5257_s12  ;;  %p5262_p4 = scmp.lt.s32.totalorder %s93_s19, %s93_s19 }
  0x81   :  { %p5263_p5 = scmp.lt.s32.totalorder %s5261_s13, %s5257_s12 }
  0x83   :  { %p5264_p6 = por %p5263_p5, %p5262_p4 }
  0x85   :  { %p5265_p7 = pnand %p5264_p6, %p5258_p3 }
  0x87   :  { %5268 = shalt.err (!%p5265_p7)
}
  0x88   :  { %95 = dma.hbm_to_vmem [thread:$0]  %s5582_s6, 16, %s93_s19, [#allocation12]  }
  0x89   :  { %s5337_s0 = smov [#allocation16]   ;;  %s5269_s17 = scalar_lea.hbm %s5584_s8, 16 }
  0x8a   :  { %s114_s15 = sshll.u32 %s5337_s0, 4  ;;  %p5270_p8 = scmp.ne.s32.totalorder %s5584_s8, %s5269_s17  ;;  %s115_s15 = int_to_ptr.vmem [resolvable:$true] %s114_s15 }
  0x8b   :  { %p5273_p9 = scmp.lt.u32.totalorder %s5269_s17, %s5584_s8 }
  0x8d   :  { %p5275_p10 = pnand %p5273_p9, %p5270_p8 }
  0x8f   :  { %5278 = shalt.err (!%p5275_p10)
}
  0x90   :  { %s5279_s26 = scalar_lea.vmem %s115_s15, 16  ;;  %s5283_s6 = scalar_lea.vmem %s115_s15, 32 }
  0x91   :  { %p5280_p11 = scmp.ne.s32.totalorder %s115_s15, %s5279_s26  ;;  %p5284_p12 = scmp.lt.s32.totalorder %s115_s15, %s115_s15 }
  0x92   :  { %p5285_p13 = scmp.lt.s32.totalorder %s5283_s6, %s5279_s26 }
  0x94   :  { %p5286_p0 = por %p5285_p13, %p5284_p12 }
  0x96   :  { %p5287_p1 = pnand %p5286_p0, %p5280_p11 }
  0x98   :  { %5290 = shalt.err (!%p5287_p1)
}
  0x99   :  { %117 = dma.hbm_to_vmem [thread:$0]  %s5584_s8, 16, %s115_s15, [#allocation15]  }
  0x9a   :  { %5313 = dma.done.wait [#allocation3], 832  }
  0x9b   :  { %5314 = vsyncadd [#allocation3], 4294966464 }
  0x9c   :  { %5315 = dma.done.wait [#allocation6], 51264  }
  0x9d   :  { %5316 = vsyncadd [#allocation6], 4294916032 }
  0x9e   :  { %5317 = dma.done.wait [#allocation9], 4112  }
  0x9f   :  { %5318 = vsyncadd [#allocation9], 4294963184 }
  0xa0   :  { %5319 = dma.done.wait [#allocation12], 1040  }
  0xa1   :  { %5320 = vsyncadd [#allocation12], 4294966256 }
  0xa2   :  { %5321 = dma.done.wait [#allocation15], 1040  }
  0xa3   :  { %5322 = vsyncadd [#allocation15], 4294966256  ;;  %v4432_v0 = vld [vmem:[#allocation5 + $0x4] ss:$16 sps:$4 sm:$0xff]   ;;  %v4434_v1 = vld [vmem:[#allocation5 + $0xc] ss:$16 sps:$4 sm:$0xff]  }
  0xa4   :  { %2624 = vmatprep.subr.bf16.mxu0 %v4432_v0  ;;  %v4436_v2 = vld [vmem:[#allocation5] ss:$16 sps:$4 sm:$0xff]   ;;  %v4437_v3 = vld [vmem:[#allocation5 + $0x8] ss:$16 sps:$4 sm:$0xff]   ;;  %2911 = vmatprep.subr.bf16.mxu1 %v4434_v1  ;;  %v4438_v4 = vld [vmem:[#allocation5 + $0x24] ss:$16 sps:$4 sm:$0xff]  }
  0xa5   :  { %2625 = vmatpush1.bf16.msra.mxu0 %v4436_v2  ;;  %2912 = vmatpush1.bf16.msra.mxu1 %v4437_v3  ;;  %v4440_v5 = vld [vmem:[#allocation5 + $0x2c] ss:$16 sps:$4 sm:$0xff]   ;;  %v4442_v6 = vld [vmem:[#allocation5 + $0x20] ss:$16 sps:$4 sm:$0xff]   ;;  %v4443_v7 = vld [vmem:[#allocation5 + $0x28] ss:$16 sps:$4 sm:$0xff]  }
  0xa6   :  { %2626 = vmatprep.subr.bf16.mxu0 %v4438_v4  ;;  %2913 = vmatprep.subr.bf16.mxu1 %v4440_v5  ;;  %v4444_v8 = vld [vmem:[#allocation5 + $0x44] ss:$16 sps:$4 sm:$0xff]   ;;  %v4446_v9 = vld [vmem:[#allocation5 + $0x4c] ss:$16 sps:$4 sm:$0xff]   ;;  %v4448_v10 = vld [vmem:[#allocation5 + $0x40] ss:$16 sps:$4 sm:$0xff]  }
  0xa7   :  { %v4449_v11 = vld [vmem:[#allocation5 + $0x48] ss:$16 sps:$4 sm:$0xff]   ;;  %v4450_v12 = vld [vmem:[#allocation5 + $0x64] ss:$16 sps:$4 sm:$0xff]   ;;  %v4452_v13 = vld [vmem:[#allocation5 + $0x6c] ss:$16 sps:$4 sm:$0xff]  }
  0xa8   :  { %v4454_v14 = vld [vmem:[#allocation5 + $0x60] ss:$16 sps:$4 sm:$0xff]   ;;  %v4455_v15 = vld [vmem:[#allocation5 + $0x68] ss:$16 sps:$4 sm:$0xff]   ;;  %v4456_v16 = vld [vmem:[#allocation5 + $0x84] ss:$16 sps:$4 sm:$0xff]  }
  0xa9   :  { %2627 = vmatpush1.bf16.msra.mxu0 %v4442_v6  ;;  %2914 = vmatpush1.bf16.msra.mxu1 %v4443_v7  ;;  %v4458_v17 = vld [vmem:[#allocation5 + $0x8c] ss:$16 sps:$4 sm:$0xff]   ;;  %v4460_v18 = vld [vmem:[#allocation5 + $0x80] ss:$16 sps:$4 sm:$0xff]   ;;  %v4461_v19 = vld [vmem:[#allocation5 + $0x88] ss:$16 sps:$4 sm:$0xff]  }
  0xaa   :  { %2628 = vmatprep.subr.bf16.mxu0 %v4444_v8  ;;  %2915 = vmatprep.subr.bf16.mxu1 %v4446_v9  ;;  %v4462_v20 = vld [vmem:[#allocation5 + $0xa4] ss:$16 sps:$4 sm:$0xff]   ;;  %v4464_v21 = vld [vmem:[#allocation5 + $0xac] ss:$16 sps:$4 sm:$0xff]   ;;  %v4466_v22 = vld [vmem:[#allocation5 + $0xa0] ss:$16 sps:$4 sm:$0xff]  }
  0xab   :  { %v4467_v23 = vld [vmem:[#allocation5 + $0xa8] ss:$16 sps:$4 sm:$0xff]   ;;  %v4468_v24 = vld [vmem:[#allocation5 + $0xc4] ss:$16 sps:$4 sm:$0xff]   ;;  %v4470_v25 = vld [vmem:[#allocation5 + $0xcc] ss:$16 sps:$4 sm:$0xff]  }
  0xac   :  { %v4472_v26 = vld [vmem:[#allocation5 + $0xc0] ss:$16 sps:$4 sm:$0xff]   ;;  %v4473_v27 = vld [vmem:[#allocation5 + $0xc8] ss:$16 sps:$4 sm:$0xff]   ;;  %v4474_v28 = vld [vmem:[#allocation5 + $0xe4] ss:$16 sps:$4 sm:$0xff]  }
  0xad   :  { %2629 = vmatpush1.bf16.msra.mxu0 %v4448_v10  ;;  %2916 = vmatpush1.bf16.msra.mxu1 %v4449_v11  ;;  %v4476_v29 = vld [vmem:[#allocation5 + $0xec] ss:$16 sps:$4 sm:$0xff]   ;;  %v4478_v30 = vld [vmem:[#allocation5 + $0xe0] ss:$16 sps:$4 sm:$0xff]   ;;  %v4479_v31 = vld [vmem:[#allocation5 + $0xe8] ss:$16 sps:$4 sm:$0xff]  }
  0xae   :  { %2630 = vmatprep.subr.bf16.mxu0 %v4450_v12  ;;  %2917 = vmatprep.subr.bf16.mxu1 %v4452_v13  ;;  %v4480_v32 = vld [vmem:[#allocation5 + $0x104] ss:$16 sps:$4 sm:$0xff]   ;;  %v4482_v33 = vld [vmem:[#allocation5 + $0x10c] ss:$16 sps:$4 sm:$0xff]   ;;  %v4484_v34 = vld [vmem:[#allocation5 + $0x100] ss:$16 sps:$4 sm:$0xff]  }
  0xaf   :  { %v4485_v35 = vld [vmem:[#allocation5 + $0x108] ss:$16 sps:$4 sm:$0xff]   ;;  %v4486_v36 = vld [vmem:[#allocation5 + $0x124] ss:$16 sps:$4 sm:$0xff]   ;;  %v4488_v37 = vld [vmem:[#allocation5 + $0x12c] ss:$16 sps:$4 sm:$0xff]  }
  0xb0   :  { %v4490_v38 = vld [vmem:[#allocation5 + $0x120] ss:$16 sps:$4 sm:$0xff]   ;;  %v4491_v39 = vld [vmem:[#allocation5 + $0x128] ss:$16 sps:$4 sm:$0xff]   ;;  %v4492_v40 = vld [vmem:[#allocation5 + $0x144] ss:$16 sps:$4 sm:$0xff]  }
  0xb1   :  { %2631 = vmatpush1.bf16.msra.mxu0 %v4454_v14  ;;  %2918 = vmatpush1.bf16.msra.mxu1 %v4455_v15  ;;  %v4494_v41 = vld [vmem:[#allocation5 + $0x14c] ss:$16 sps:$4 sm:$0xff]   ;;  %v4496_v42 = vld [vmem:[#allocation5 + $0x140] ss:$16 sps:$4 sm:$0xff]   ;;  %v4497_v43 = vld [vmem:[#allocation5 + $0x148] ss:$16 sps:$4 sm:$0xff]  }
  0xb2   :  { %2632 = vmatprep.subr.bf16.mxu0 %v4456_v16  ;;  %2919 = vmatprep.subr.bf16.mxu1 %v4458_v17  ;;  %v4498_v44 = vld [vmem:[#allocation5 + $0x164] ss:$16 sps:$4 sm:$0xff]   ;;  %v4500_v45 = vld [vmem:[#allocation5 + $0x16c] ss:$16 sps:$4 sm:$0xff]   ;;  %v4502_v47 = vld [vmem:[#allocation5 + $0x160] ss:$16 sps:$4 sm:$0xff]  }
  0xb3   :  { %v146_v46 = vld [vmem:[#allocation2] sm:$0xff]  ;;  %v4503_v49 = vld [vmem:[#allocation5 + $0x168] ss:$16 sps:$4 sm:$0xff]   ;;  %v4504_v50 = vld [vmem:[#allocation5 + $0x184] ss:$16 sps:$4 sm:$0xff]   ;;  %vm2620_vm0 = vcmask 523264  }
  0xb4   :  { %v3796_v48 = vcombine.high %v146_v46, %v146_v46  ;;  %v4506_v51 = vld [vmem:[#allocation5 + $0x18c] ss:$16 sps:$4 sm:$0xff]   ;;  %v4508_v52 = vld [vmem:[#allocation5 + $0x180] ss:$16 sps:$4 sm:$0xff]   ;;  %v4509_v53 = vld [vmem:[#allocation5 + $0x188] ss:$16 sps:$4 sm:$0xff]   ;;  %v3795_v4 = vcombine.low %v146_v46, %v146_v46 }
  0xb5   :  { %2633 = vmatpush1.bf16.msra.mxu0 %v4460_v18  ;;  %2920 = vmatpush1.bf16.msra.mxu1 %v4461_v19  ;;  %v4510_v54 = vld [vmem:[#allocation5 + $0x1a4] ss:$16 sps:$4 sm:$0xff]   ;;  %v4512_v55 = vld [vmem:[#allocation5 + $0x1ac] ss:$16 sps:$4 sm:$0xff]   ;;  %v4514_v56 = vld [vmem:[#allocation5 + $0x1a0] ss:$16 sps:$4 sm:$0xff]  }
  0xb6   :  { %2634 = vmatprep.subr.bf16.mxu0 %v4462_v20  ;;  %2921 = vmatprep.subr.bf16.mxu1 %v4464_v21  ;;  %v4515_v57 = vld [vmem:[#allocation5 + $0x1a8] ss:$16 sps:$4 sm:$0xff]   ;;  %v4516_v58 = vld [vmem:[#allocation5 + $0x1c4] ss:$16 sps:$4 sm:$0xff]   ;;  %v4518_v59 = vld [vmem:[#allocation5 + $0x1cc] ss:$16 sps:$4 sm:$0xff]  }
  0xb7   :  { %2656 = vmatprep.mubr.bf16.mxu0 %v3796_v48  ;;  %2943 = vmatprep.mubr.bf16.mxu1 %v3796_v48  ;;  %v4520_v60 = vld [vmem:[#allocation5 + $0x1c0] ss:$16 sps:$4 sm:$0xff]   ;;  %v4521_v61 = vld [vmem:[#allocation5 + $0x1c8] ss:$16 sps:$4 sm:$0xff]   ;;  %v4522_v62 = vld [vmem:[#allocation5 + $0x1e4] ss:$16 sps:$4 sm:$0xff]  }
  0xb8   :  { %v4524_v63 = vld [vmem:[#allocation5 + $0x1ec] ss:$16 sps:$4 sm:$0xff]   ;;  %v4526_v0 = vld [vmem:[#allocation5 + $0x1e0] ss:$16 sps:$4 sm:$0xff]   ;;  %v4527_v1 = vld [vmem:[#allocation5 + $0x1e8] ss:$16 sps:$4 sm:$0xff]  }
  0xb9   :  { %2635 = vmatpush1.bf16.msra.mxu0 %v4466_v22  ;;  %2922 = vmatpush1.bf16.msra.mxu1 %v4467_v23  ;;  %v4532_v2 = vld [vmem:[#allocation5 + $0x204] ss:$16 sps:$4 sm:$0xff]   ;;  %v4535_v3 = vld [vmem:[#allocation5 + $0x20c] ss:$16 sps:$4 sm:$0xff]   ;;  %v4530_v5 = vld [vmem:[#allocation5 + $0x200] ss:$16 sps:$4 sm:$0xff]  }
  0xba   :  { %2636 = vmatprep.subr.bf16.mxu0 %v4468_v24  ;;  %2923 = vmatprep.subr.bf16.mxu1 %v4470_v25  ;;  %v4533_v6 = vld [vmem:[#allocation5 + $0x208] ss:$16 sps:$4 sm:$0xff]   ;;  %v4538_v7 = vld [vmem:[#allocation5 + $0x224] ss:$16 sps:$4 sm:$0xff]   ;;  %v4541_v8 = vld [vmem:[#allocation5 + $0x22c] ss:$16 sps:$4 sm:$0xff]  }
  0xbb   :  { %v4536_v9 = vld [vmem:[#allocation5 + $0x220] ss:$16 sps:$4 sm:$0xff]   ;;  %v4539_v10 = vld [vmem:[#allocation5 + $0x228] ss:$16 sps:$4 sm:$0xff]   ;;  %v4544_v11 = vld [vmem:[#allocation5 + $0x244] ss:$16 sps:$4 sm:$0xff]  }
  0xbc   :  { %v4547_v12 = vld [vmem:[#allocation5 + $0x24c] ss:$16 sps:$4 sm:$0xff]   ;;  %v4542_v13 = vld [vmem:[#allocation5 + $0x240] ss:$16 sps:$4 sm:$0xff]   ;;  %v4545_v14 = vld [vmem:[#allocation5 + $0x248] ss:$16 sps:$4 sm:$0xff]  }
  0xbd   :  { %2637 = vmatpush1.bf16.msra.mxu0 %v4472_v26  ;;  %2924 = vmatpush1.bf16.msra.mxu1 %v4473_v27  ;;  %v4550_v15 = vld [vmem:[#allocation5 + $0x264] ss:$16 sps:$4 sm:$0xff]   ;;  %v4553_v16 = vld [vmem:[#allocation5 + $0x26c] ss:$16 sps:$4 sm:$0xff]   ;;  %v4548_v17 = vld [vmem:[#allocation5 + $0x260] ss:$16 sps:$4 sm:$0xff]  }
  0xbe   :  { %2638 = vmatprep.subr.bf16.mxu0 %v4474_v28  ;;  %2925 = vmatprep.subr.bf16.mxu1 %v4476_v29  ;;  %v4551_v18 = vld [vmem:[#allocation5 + $0x268] ss:$16 sps:$4 sm:$0xff]   ;;  %v4556_v19 = vld [vmem:[#allocation5 + $0x284] ss:$16 sps:$4 sm:$0xff]   ;;  %v4559_v20 = vld [vmem:[#allocation5 + $0x28c] ss:$16 sps:$4 sm:$0xff]  }
  0xbf   :  { %v4554_v21 = vld [vmem:[#allocation5 + $0x280] ss:$16 sps:$4 sm:$0xff]   ;;  %v4557_v22 = vld [vmem:[#allocation5 + $0x288] ss:$16 sps:$4 sm:$0xff]   ;;  %v4562_v23 = vld [vmem:[#allocation5 + $0x2a4] ss:$16 sps:$4 sm:$0xff]  }
  0xc0   :  { %v4565_v24 = vld [vmem:[#allocation5 + $0x2ac] ss:$16 sps:$4 sm:$0xff]   ;;  %v4560_v25 = vld [vmem:[#allocation5 + $0x2a0] ss:$16 sps:$4 sm:$0xff]   ;;  %v4563_v26 = vld [vmem:[#allocation5 + $0x2a8] ss:$16 sps:$4 sm:$0xff]  }
  0xc1   :  { %2639 = vmatpush1.bf16.msra.mxu0 %v4478_v30  ;;  %2926 = vmatpush1.bf16.msra.mxu1 %v4479_v31  ;;  %v4568_v27 = vld [vmem:[#allocation5 + $0x2c4] ss:$16 sps:$4 sm:$0xff]   ;;  %v4571_v28 = vld [vmem:[#allocation5 + $0x2cc] ss:$16 sps:$4 sm:$0xff]   ;;  %v4566_v31 = vld [vmem:[#allocation5 + $0x2c0] ss:$16 sps:$4 sm:$0xff]  }
  0xc2   :  { %2640 = vmatprep.subr.bf16.mxu0 %v4480_v32  ;;  %2927 = vmatprep.subr.bf16.mxu1 %v4482_v33  ;;  %v5516_v29 = vld [vmem:[#allocation2 + $0x8] sm:$0xff]  ;;  %v4595_v46 = vld [vmem:[#allocation5 + $0x34c] ss:$16 sps:$4 sm:$0xff]   ;;  %vm5340_vm1 = vmmov 0   ;;  %s5341_s8 = smov [#allocation17]  }
  0xc3   :  { %v3798_v30 = vcombine.high %v5516_v29, %v5516_v29  ;;  %v4569_v32 = vld [vmem:[#allocation5 + $0x2c8] ss:$16 sps:$4 sm:$0xff]   ;;  %v4574_v33 = vld [vmem:[#allocation5 + $0x2e4] ss:$16 sps:$4 sm:$0xff]   ;;  %s3782_s24 = sshll.u32 %s5341_s8, 4  ;;  %s3783_s24 = int_to_ptr.vmem [resolvable:$true] %s3782_s24 }
  0xc4   :  { %v4593_v48 = vld [vmem:[#allocation5 + $0x348] ss:$16 sps:$4 sm:$0xff]   ;;  %s5291_s2 = scalar_lea.vmem %s3783_s24, 128  ;;  %p5296_p3 = scmp.lt.s32.totalorder %s3783_s24, %s3783_s24 }
  0xc5   :  { %2641 = vmatpush1.bf16.msra.mxu0 %v4484_v34  ;;  %2928 = vmatpush1.bf16.msra.mxu1 %v4485_v35  ;;  %v4577_v34 = vld [vmem:[#allocation5 + $0x2ec] ss:$16 sps:$4 sm:$0xff]   ;;  %v4572_v35 = vld [vmem:[#allocation5 + $0x2e0] ss:$16 sps:$4 sm:$0xff]   ;;  %p5292_p2 = scmp.ne.s32.totalorder %s3783_s24, %s5291_s2  ;;  %p5297_p4 = scmp.lt.s32.totalorder %s5291_s2, %s5291_s2 }
  0xc6   :  { %2642 = vmatprep.subr.bf16.mxu0 %v4486_v36  ;;  %2929 = vmatprep.subr.bf16.mxu1 %v4488_v37  ;;  %v4575_v36 = vld [vmem:[#allocation5 + $0x2e8] ss:$16 sps:$4 sm:$0xff]   ;;  %v4580_v37 = vld [vmem:[#allocation5 + $0x304] ss:$16 sps:$4 sm:$0xff]  }
  0xc7   :  { %p5298_p5 = por %p5297_p4, %p5296_p3 }
  0xc9   :  { %2643 = vmatpush1.bf16.msra.mxu0 %v4490_v38  ;;  %2930 = vmatpush1.bf16.msra.mxu1 %v4491_v39  ;;  %v4583_v38 = vld [vmem:[#allocation5 + $0x30c] ss:$16 sps:$4 sm:$0xff]   ;;  %v4578_v39 = vld [vmem:[#allocation5 + $0x300] ss:$16 sps:$4 sm:$0xff]   ;;  %p5299_p6 = pnand %p5298_p5, %p5292_p2 }
  0xca   :  { %2644 = vmatprep.subr.bf16.mxu0 %v4492_v40  ;;  %2931 = vmatprep.subr.bf16.mxu1 %v4494_v41  ;;  %v4581_v40 = vld [vmem:[#allocation5 + $0x308] ss:$16 sps:$4 sm:$0xff]   ;;  %v4586_v41 = vld [vmem:[#allocation5 + $0x324] ss:$16 sps:$4 sm:$0xff]  }
  0xcd   :  { %2645 = vmatpush1.bf16.msra.mxu0 %v4496_v42  ;;  %2932 = vmatpush1.bf16.msra.mxu1 %v4497_v43  ;;  %v4589_v42 = vld [vmem:[#allocation5 + $0x32c] ss:$16 sps:$4 sm:$0xff]   ;;  %v4584_v43 = vld [vmem:[#allocation5 + $0x320] ss:$16 sps:$4 sm:$0xff]  }
  0xce   :  { %2646 = vmatprep.subr.bf16.mxu0 %v4498_v44  ;;  %2933 = vmatprep.subr.bf16.mxu1 %v4500_v45  ;;  %v4587_v44 = vld [vmem:[#allocation5 + $0x328] ss:$16 sps:$4 sm:$0xff]   ;;  %v4592_v45 = vld [vmem:[#allocation5 + $0x344] ss:$16 sps:$4 sm:$0xff]  }
  0xd1   :  { %2647 = vmatpush1.bf16.msra.mxu0 %v4502_v47  ;;  %2934 = vmatpush1.bf16.msra.mxu1 %v4503_v49  ;;  %v4590_v47 = vld [vmem:[#allocation5 + $0x340] ss:$16 sps:$4 sm:$0xff]   ;;  %v4598_v49 = vld [vmem:[#allocation5 + $0x364] ss:$16 sps:$4 sm:$0xff]  }
  0xd2   :  { %2648 = vmatprep.subr.bf16.mxu0 %v4504_v50  ;;  %2935 = vmatprep.subr.bf16.mxu1 %v4506_v51  ;;  %v4601_v50 = vld [vmem:[#allocation5 + $0x36c] ss:$16 sps:$4 sm:$0xff]   ;;  %v4596_v51 = vld [vmem:[#allocation5 + $0x360] ss:$16 sps:$4 sm:$0xff]  }
  0xd5   :  { %2649 = vmatpush1.bf16.msra.mxu0 %v4508_v52  ;;  %2936 = vmatpush1.bf16.msra.mxu1 %v4509_v53  ;;  %v4599_v52 = vld [vmem:[#allocation5 + $0x368] ss:$16 sps:$4 sm:$0xff]   ;;  %v4604_v53 = vld [vmem:[#allocation5 + $0x384] ss:$16 sps:$4 sm:$0xff]  }
  0xd6   :  { %2650 = vmatprep.subr.bf16.mxu0 %v4510_v54  ;;  %2937 = vmatprep.subr.bf16.mxu1 %v4512_v55  ;;  %v4607_v54 = vld [vmem:[#allocation5 + $0x38c] ss:$16 sps:$4 sm:$0xff]   ;;  %v4602_v55 = vld [vmem:[#allocation5 + $0x380] ss:$16 sps:$4 sm:$0xff]  }
  0xd9   :  { %2651 = vmatpush1.bf16.msra.mxu0 %v4514_v56  ;;  %2938 = vmatpush1.bf16.msra.mxu1 %v4515_v57  ;;  %v4605_v56 = vld [vmem:[#allocation5 + $0x388] ss:$16 sps:$4 sm:$0xff]   ;;  %v4610_v57 = vld [vmem:[#allocation5 + $0x3a4] ss:$16 sps:$4 sm:$0xff]  }
  0xda   :  { %2652 = vmatprep.subr.bf16.mxu0 %v4516_v58  ;;  %2939 = vmatprep.subr.bf16.mxu1 %v4518_v59  ;;  %v4613_v58 = vld [vmem:[#allocation5 + $0x3ac] ss:$16 sps:$4 sm:$0xff]   ;;  %v4608_v59 = vld [vmem:[#allocation5 + $0x3a0] ss:$16 sps:$4 sm:$0xff]  }
  0xdd   :  { %2653 = vmatpush1.bf16.msra.mxu0 %v4520_v60  ;;  %2940 = vmatpush1.bf16.msra.mxu1 %v4521_v61  ;;  %v4611_v60 = vld [vmem:[#allocation5 + $0x3a8] ss:$16 sps:$4 sm:$0xff]   ;;  %v4616_v61 = vld [vmem:[#allocation5 + $0x3c4] ss:$16 sps:$4 sm:$0xff]  }
  0xde   :  { %2654 = vmatprep.subr.bf16.mxu0 %v4522_v62  ;;  %2941 = vmatprep.subr.bf16.mxu1 %v4524_v63  ;;  %v4619_v62 = vld [vmem:[#allocation5 + $0x3cc] ss:$16 sps:$4 sm:$0xff]   ;;  %v4614_v63 = vld [vmem:[#allocation5 + $0x3c0] ss:$16 sps:$4 sm:$0xff]  }
  0xe1   :  { %2655 = vmatpush1.bf16.msra.mxu0 %v4526_v0  ;;  %2942 = vmatpush1.bf16.msra.mxu1 %v4527_v1  ;;  %v4617_v0 = vld [vmem:[#allocation5 + $0x3c8] ss:$16 sps:$4 sm:$0xff]   ;;  %v4622_v1 = vld [vmem:[#allocation5 + $0x3e4] ss:$16 sps:$4 sm:$0xff]  }
  0xe2   :  { %2665 = vmatprep.subr.bf16.mxu0 %v4532_v2  ;;  %2952 = vmatprep.subr.bf16.mxu1 %v4535_v3  ;;  %v4625_v2 = vld [vmem:[#allocation5 + $0x3ec] ss:$16 sps:$4 sm:$0xff]   ;;  %v4620_v3 = vld [vmem:[#allocation5 + $0x3e0] ss:$16 sps:$4 sm:$0xff]  }
  0xe4   :  { %2657 = vmatmul.mubr.bf16.vlgmr.msra.gmra.mrb[0].mxu0 %v3795_v4  ;;  %2944 = vmatmul.mubr.bf16.vlgmr.msra.gmra.mrb[0].mxu1 %v3795_v4  ;;  %v4623_v4 = vld [vmem:[#allocation5 + $0x3e8] ss:$16 sps:$4 sm:$0xff]  }
  0xe5   :  { %2666 = vmatpush1.bf16.msra.mxu0 %v4530_v5  ;;  %2953 = vmatpush1.bf16.msra.mxu1 %v4533_v6  ;;  %v4630_v5 = vld [vmem:[#allocation5 + $0x404] ss:$16 sps:$4 sm:$0xff]   ;;  %v4633_v6 = vld [vmem:[#allocation5 + $0x40c] ss:$16 sps:$4 sm:$0xff]  }
  0xe6   :  { %2667 = vmatprep.subr.bf16.mxu0 %v4538_v7  ;;  %2954 = vmatprep.subr.bf16.mxu1 %v4541_v8  ;;  %v3797_v7 = vcombine.low %v5516_v29, %v5516_v29  ;;  %v4628_v8 = vld [vmem:[#allocation5 + $0x400] ss:$16 sps:$4 sm:$0xff]   ;;  %v4663_v29 = vld [vmem:[#allocation5 + $0x4ac] ss:$16 sps:$4 sm:$0xff]  }
  0xe7   :  { %2697 = vmatprep.mubr.bf16.mxu0 %v3798_v30  ;;  %2984 = vmatprep.mubr.bf16.mxu1 %v3798_v30  ;;  %v4658_v30 = vld [vmem:[#allocation5 + $0x4a0] ss:$16 sps:$4 sm:$0xff]  }
  0xe9   :  { %2668 = vmatpush1.bf16.msra.mxu0 %v4536_v9  ;;  %2955 = vmatpush1.bf16.msra.mxu1 %v4539_v10  ;;  %v4631_v9 = vld [vmem:[#allocation5 + $0x408] ss:$16 sps:$4 sm:$0xff]   ;;  %v4636_v10 = vld [vmem:[#allocation5 + $0x424] ss:$16 sps:$4 sm:$0xff]  }
  0xea   :  { %2669 = vmatprep.subr.bf16.mxu0 %v4544_v11  ;;  %2956 = vmatprep.subr.bf16.mxu1 %v4547_v12  ;;  %v5522_v11 = vld [vmem:[#allocation2 + $0x10] sm:$0xff] }
  0xeb   :  { %v4639_v12 = vld [vmem:[#allocation5 + $0x42c] ss:$16 sps:$4 sm:$0xff]  }
  0xed   :  { %2670 = vmatpush1.bf16.msra.mxu0 %v4542_v13  ;;  %2957 = vmatpush1.bf16.msra.mxu1 %v4545_v14  ;;  %v3800_v13 = vcombine.high %v5522_v11, %v5522_v11  ;;  %v4634_v14 = vld [vmem:[#allocation5 + $0x420] ss:$16 sps:$4 sm:$0xff]  }
  0xee   :  { %2671 = vmatprep.subr.bf16.mxu0 %v4550_v15  ;;  %2958 = vmatprep.subr.bf16.mxu1 %v4553_v16  ;;  %v4637_v15 = vld [vmem:[#allocation5 + $0x428] ss:$16 sps:$4 sm:$0xff]   ;;  %v4642_v16 = vld [vmem:[#allocation5 + $0x444] ss:$16 sps:$4 sm:$0xff]  }
  0xf1   :  { %2672 = vmatpush1.bf16.msra.mxu0 %v4548_v17  ;;  %2959 = vmatpush1.bf16.msra.mxu1 %v4551_v18  ;;  %v4645_v17 = vld [vmem:[#allocation5 + $0x44c] ss:$16 sps:$4 sm:$0xff]   ;;  %v4640_v18 = vld [vmem:[#allocation5 + $0x440] ss:$16 sps:$4 sm:$0xff]  }
  0xf2   :  { %2673 = vmatprep.subr.bf16.mxu0 %v4556_v19  ;;  %2960 = vmatprep.subr.bf16.mxu1 %v4559_v20  ;;  %v4643_v19 = vld [vmem:[#allocation5 + $0x448] ss:$16 sps:$4 sm:$0xff]   ;;  %v4648_v20 = vld [vmem:[#allocation5 + $0x464] ss:$16 sps:$4 sm:$0xff]  }
  0xf5   :  { %2674 = vmatpush1.bf16.msra.mxu0 %v4554_v21  ;;  %2961 = vmatpush1.bf16.msra.mxu1 %v4557_v22  ;;  %v4651_v21 = vld [vmem:[#allocation5 + $0x46c] ss:$16 sps:$4 sm:$0xff]   ;;  %v4646_v22 = vld [vmem:[#allocation5 + $0x460] ss:$16 sps:$4 sm:$0xff]  }
  0xf6   :  { %2675 = vmatprep.subr.bf16.mxu0 %v4562_v23  ;;  %2962 = vmatprep.subr.bf16.mxu1 %v4565_v24  ;;  %v4649_v23 = vld [vmem:[#allocation5 + $0x468] ss:$16 sps:$4 sm:$0xff]   ;;  %v4654_v24 = vld [vmem:[#allocation5 + $0x484] ss:$16 sps:$4 sm:$0xff]  }
  0xf9   :  { %2676 = vmatpush1.bf16.msra.mxu0 %v4560_v25  ;;  %2963 = vmatpush1.bf16.msra.mxu1 %v4563_v26  ;;  %v4657_v25 = vld [vmem:[#allocation5 + $0x48c] ss:$16 sps:$4 sm:$0xff]   ;;  %v4652_v26 = vld [vmem:[#allocation5 + $0x480] ss:$16 sps:$4 sm:$0xff]  }
  0xfa   :  { %2677 = vmatprep.subr.bf16.mxu0 %v4568_v27  ;;  %2964 = vmatprep.subr.bf16.mxu1 %v4571_v28  ;;  %v4655_v27 = vld [vmem:[#allocation5 + $0x488] ss:$16 sps:$4 sm:$0xff]   ;;  %v4660_v28 = vld [vmem:[#allocation5 + $0x4a4] ss:$16 sps:$4 sm:$0xff]  }
  0xfd   :  { %2678 = vmatpush1.bf16.msra.mxu0 %v4566_v31  ;;  %2965 = vmatpush1.bf16.msra.mxu1 %v4569_v32  ;;  %v4661_v31 = vld [vmem:[#allocation5 + $0x4a8] ss:$16 sps:$4 sm:$0xff]   ;;  %v4666_v32 = vld [vmem:[#allocation5 + $0x4c4] ss:$16 sps:$4 sm:$0xff]  }
  0xfe   :  { %2679 = vmatprep.subr.bf16.mxu0 %v4574_v33  ;;  %2966 = vmatprep.subr.bf16.mxu1 %v4577_v34  ;;  %v4669_v33 = vld [vmem:[#allocation5 + $0x4cc] ss:$16 sps:$4 sm:$0xff]   ;;  %v4664_v34 = vld [vmem:[#allocation5 + $0x4c0] ss:$16 sps:$4 sm:$0xff]  }
 0x101   :  { %2680 = vmatpush1.bf16.msra.mxu0 %v4572_v35  ;;  %2967 = vmatpush1.bf16.msra.mxu1 %v4575_v36  ;;  %v4667_v35 = vld [vmem:[#allocation5 + $0x4c8] ss:$16 sps:$4 sm:$0xff]   ;;  %v4672_v36 = vld [vmem:[#allocation5 + $0x4e4] ss:$16 sps:$4 sm:$0xff]  }
 0x102   :  { %2681 = vmatprep.subr.bf16.mxu0 %v4580_v37  ;;  %2968 = vmatprep.subr.bf16.mxu1 %v4583_v38  ;;  %v4675_v37 = vld [vmem:[#allocation5 + $0x4ec] ss:$16 sps:$4 sm:$0xff]   ;;  %v4670_v38 = vld [vmem:[#allocation5 + $0x4e0] ss:$16 sps:$4 sm:$0xff]  }
 0x105   :  { %2682 = vmatpush1.bf16.msra.mxu0 %v4578_v39  ;;  %2969 = vmatpush1.bf16.msra.mxu1 %v4581_v40  ;;  %v4673_v39 = vld [vmem:[#allocation5 + $0x4e8] ss:$16 sps:$4 sm:$0xff]   ;;  %v4678_v40 = vld [vmem:[#allocation5 + $0x504] ss:$16 sps:$4 sm:$0xff]  }
 0x106   :  { %2683 = vmatprep.subr.bf16.mxu0 %v4586_v41  ;;  %2970 = vmatprep.subr.bf16.mxu1 %v4589_v42  ;;  %v4681_v41 = vld [vmem:[#allocation5 + $0x50c] ss:$16 sps:$4 sm:$0xff]   ;;  %v4676_v42 = vld [vmem:[#allocation5 + $0x500] ss:$16 sps:$4 sm:$0xff]  }
 0x109   :  { %2684 = vmatpush1.bf16.msra.mxu0 %v4584_v43  ;;  %2971 = vmatpush1.bf16.msra.mxu1 %v4587_v44  ;;  %v4679_v43 = vld [vmem:[#allocation5 + $0x508] ss:$16 sps:$4 sm:$0xff]   ;;  %v4684_v44 = vld [vmem:[#allocation5 + $0x524] ss:$16 sps:$4 sm:$0xff]  }
 0x10a   :  { %2685 = vmatprep.subr.bf16.mxu0 %v4592_v45  ;;  %2972 = vmatprep.subr.bf16.mxu1 %v4595_v46  ;;  %v4687_v45 = vld [vmem:[#allocation5 + $0x52c] ss:$16 sps:$4 sm:$0xff]   ;;  %v4682_v46 = vld [vmem:[#allocation5 + $0x520] ss:$16 sps:$4 sm:$0xff]  }
 0x10d   :  { %2686 = vmatpush1.bf16.msra.mxu0 %v4590_v47  ;;  %2973 = vmatpush1.bf16.msra.mxu1 %v4593_v48  ;;  %v4685_v47 = vld [vmem:[#allocation5 + $0x528] ss:$16 sps:$4 sm:$0xff]   ;;  %v4690_v48 = vld [vmem:[#allocation5 + $0x544] ss:$16 sps:$4 sm:$0xff]  }
 0x10e   :  { %2687 = vmatprep.subr.bf16.mxu0 %v4598_v49  ;;  %2974 = vmatprep.subr.bf16.mxu1 %v4601_v50  ;;  %v4693_v49 = vld [vmem:[#allocation5 + $0x54c] ss:$16 sps:$4 sm:$0xff]   ;;  %v4688_v50 = vld [vmem:[#allocation5 + $0x540] ss:$16 sps:$4 sm:$0xff]  }
 0x111   :  { %2688 = vmatpush1.bf16.msra.mxu0 %v4596_v51  ;;  %2975 = vmatpush1.bf16.msra.mxu1 %v4599_v52  ;;  %v4691_v51 = vld [vmem:[#allocation5 + $0x548] ss:$16 sps:$4 sm:$0xff]   ;;  %v4696_v52 = vld [vmem:[#allocation5 + $0x564] ss:$16 sps:$4 sm:$0xff]  }
 0x112   :  { %2689 = vmatprep.subr.bf16.mxu0 %v4604_v53  ;;  %2976 = vmatprep.subr.bf16.mxu1 %v4607_v54  ;;  %v4699_v53 = vld [vmem:[#allocation5 + $0x56c] ss:$16 sps:$4 sm:$0xff]   ;;  %v4694_v54 = vld [vmem:[#allocation5 + $0x560] ss:$16 sps:$4 sm:$0xff]  }
 0x115   :  { %2690 = vmatpush1.bf16.msra.mxu0 %v4602_v55  ;;  %2977 = vmatpush1.bf16.msra.mxu1 %v4605_v56  ;;  %v4697_v55 = vld [vmem:[#allocation5 + $0x568] ss:$16 sps:$4 sm:$0xff]   ;;  %v4702_v56 = vld [vmem:[#allocation5 + $0x584] ss:$16 sps:$4 sm:$0xff]  }
 0x116   :  { %2691 = vmatprep.subr.bf16.mxu0 %v4610_v57  ;;  %2978 = vmatprep.subr.bf16.mxu1 %v4613_v58  ;;  %v4705_v57 = vld [vmem:[#allocation5 + $0x58c] ss:$16 sps:$4 sm:$0xff]   ;;  %v4700_v58 = vld [vmem:[#allocation5 + $0x580] ss:$16 sps:$4 sm:$0xff]  }
 0x119   :  { %2692 = vmatpush1.bf16.msra.mxu0 %v4608_v59  ;;  %2979 = vmatpush1.bf16.msra.mxu1 %v4611_v60  ;;  %v4703_v59 = vld [vmem:[#allocation5 + $0x588] ss:$16 sps:$4 sm:$0xff]   ;;  %v4708_v60 = vld [vmem:[#allocation5 + $0x5a4] ss:$16 sps:$4 sm:$0xff]  }
 0x11a   :  { %2693 = vmatprep.subr.bf16.mxu0 %v4616_v61  ;;  %2980 = vmatprep.subr.bf16.mxu1 %v4619_v62  ;;  %v4711_v61 = vld [vmem:[#allocation5 + $0x5ac] ss:$16 sps:$4 sm:$0xff]   ;;  %v4706_v62 = vld [vmem:[#allocation5 + $0x5a0] ss:$16 sps:$4 sm:$0xff]  }
 0x11d   :  { %2694 = vmatpush1.bf16.msra.mxu0 %v4614_v63  ;;  %2981 = vmatpush1.bf16.msra.mxu1 %v4617_v0  ;;  %v4709_v63 = vld [vmem:[#allocation5 + $0x5a8] ss:$16 sps:$4 sm:$0xff]   ;;  %v4714_v0 = vld [vmem:[#allocation5 + $0x5c4] ss:$16 sps:$4 sm:$0xff]  }
 0x11e   :  { %2695 = vmatprep.subr.bf16.mxu0 %v4622_v1  ;;  %2982 = vmatprep.subr.bf16.mxu1 %v4625_v2  ;;  %v4717_v1 = vld [vmem:[#allocation5 + $0x5cc] ss:$16 sps:$4 sm:$0xff]   ;;  %v4712_v2 = vld [vmem:[#allocation5 + $0x5c0] ss:$16 sps:$4 sm:$0xff]  }
 0x121   :  { %2696 = vmatpush1.bf16.msra.mxu0 %v4620_v3  ;;  %2983 = vmatpush1.bf16.msra.mxu1 %v4623_v4  ;;  %v4715_v3 = vld [vmem:[#allocation5 + $0x5c8] ss:$16 sps:$4 sm:$0xff]   ;;  %v4720_v4 = vld [vmem:[#allocation5 + $0x5e4] ss:$16 sps:$4 sm:$0xff]  }
 0x122   :  { %2706 = vmatprep.subr.bf16.mxu0 %v4630_v5  ;;  %2993 = vmatprep.subr.bf16.mxu1 %v4633_v6  ;;  %v4723_v5 = vld [vmem:[#allocation5 + $0x5ec] ss:$16 sps:$4 sm:$0xff]   ;;  %v4718_v6 = vld [vmem:[#allocation5 + $0x5e0] ss:$16 sps:$4 sm:$0xff]  }
 0x124   :  { %2698 = vmatmul.mubr.bf16.vlgmr.msra.gmra.mrb[0].mxu0 %v3797_v7  ;;  %2985 = vmatmul.mubr.bf16.vlgmr.msra.gmra.mrb[0].mxu1 %v3797_v7  ;;  %v4721_v7 = vld [vmem:[#allocation5 + $0x5e8] ss:$16 sps:$4 sm:$0xff]  }
 0x125   :  { %2707 = vmatpush1.bf16.msra.mxu0 %v4628_v8  ;;  %2994 = vmatpush1.bf16.msra.mxu1 %v4631_v9  ;;  %v4728_v8 = vld [vmem:[#allocation5 + $0x604] ss:$16 sps:$4 sm:$0xff]   ;;  %v4731_v9 = vld [vmem:[#allocation5 + $0x60c] ss:$16 sps:$4 sm:$0xff]  }
 0x126   :  { %2708 = vmatprep.subr.bf16.mxu0 %v4636_v10  ;;  %2995 = vmatprep.subr.bf16.mxu1 %v4639_v12  ;;  %v4726_v10 = vld [vmem:[#allocation5 + $0x600] ss:$16 sps:$4 sm:$0xff]   ;;  %v3799_v12 = vcombine.low %v5522_v11, %v5522_v11  ;;  %v4743_v11 = vld [vmem:[#allocation5 + $0x64c] ss:$16 sps:$4 sm:$0xff]  }
 0x127   :  { %2738 = vmatprep.mubr.bf16.mxu0 %v3800_v13  ;;  %3025 = vmatprep.mubr.bf16.mxu1 %v3800_v13  ;;  %v4729_v13 = vld [vmem:[#allocation5 + $0x608] ss:$16 sps:$4 sm:$0xff]  }
 0x129   :  { %2709 = vmatpush1.bf16.msra.mxu0 %v4634_v14  ;;  %2996 = vmatpush1.bf16.msra.mxu1 %v4637_v15  ;;  %v5528_v14 = vld [vmem:[#allocation2 + $0x18] sm:$0xff] }
 0x12a   :  { %2710 = vmatprep.subr.bf16.mxu0 %v4642_v16  ;;  %2997 = vmatprep.subr.bf16.mxu1 %v4645_v17  ;;  %v4734_v15 = vld [vmem:[#allocation5 + $0x624] ss:$16 sps:$4 sm:$0xff]   ;;  %v4737_v16 = vld [vmem:[#allocation5 + $0x62c] ss:$16 sps:$4 sm:$0xff]   ;;  %v3802_v17 = vcombine.high %v5528_v14, %v5528_v14 }
 0x12d   :  { %2711 = vmatpush1.bf16.msra.mxu0 %v4640_v18  ;;  %2998 = vmatpush1.bf16.msra.mxu1 %v4643_v19  ;;  %v4732_v18 = vld [vmem:[#allocation5 + $0x620] ss:$16 sps:$4 sm:$0xff]   ;;  %v4735_v19 = vld [vmem:[#allocation5 + $0x628] ss:$16 sps:$4 sm:$0xff]  }
 0x12e   :  { %2712 = vmatprep.subr.bf16.mxu0 %v4648_v20  ;;  %2999 = vmatprep.subr.bf16.mxu1 %v4651_v21  ;;  %v4740_v20 = vld [vmem:[#allocation5 + $0x644] ss:$16 sps:$4 sm:$0xff]   ;;  %v4738_v21 = vld [vmem:[#allocation5 + $0x640] ss:$16 sps:$4 sm:$0xff]  }
 0x131   :  { %2713 = vmatpush1.bf16.msra.mxu0 %v4646_v22  ;;  %3000 = vmatpush1.bf16.msra.mxu1 %v4649_v23  ;;  %v4741_v22 = vld [vmem:[#allocation5 + $0x648] ss:$16 sps:$4 sm:$0xff]   ;;  %v4746_v23 = vld [vmem:[#allocation5 + $0x664] ss:$16 sps:$4 sm:$0xff]  }
 0x132   :  { %2714 = vmatprep.subr.bf16.mxu0 %v4654_v24  ;;  %3001 = vmatprep.subr.bf16.mxu1 %v4657_v25  ;;  %v4749_v24 = vld [vmem:[#allocation5 + $0x66c] ss:$16 sps:$4 sm:$0xff]   ;;  %v4744_v25 = vld [vmem:[#allocation5 + $0x660] ss:$16 sps:$4 sm:$0xff]  }
 0x135   :  { %2715 = vmatpush1.bf16.msra.mxu0 %v4652_v26  ;;  %3002 = vmatpush1.bf16.msra.mxu1 %v4655_v27  ;;  %v4747_v26 = vld [vmem:[#allocation5 + $0x668] ss:$16 sps:$4 sm:$0xff]   ;;  %v4752_v27 = vld [vmem:[#allocation5 + $0x684] ss:$16 sps:$4 sm:$0xff]  }
 0x136   :  { %2716 = vmatprep.subr.bf16.mxu0 %v4660_v28  ;;  %3003 = vmatprep.subr.bf16.mxu1 %v4663_v29  ;;  %v4755_v28 = vld [vmem:[#allocation5 + $0x68c] ss:$16 sps:$4 sm:$0xff]   ;;  %v4750_v29 = vld [vmem:[#allocation5 + $0x680] ss:$16 sps:$4 sm:$0xff]  }
 0x139   :  { %2717 = vmatpush1.bf16.msra.mxu0 %v4658_v30  ;;  %3004 = vmatpush1.bf16.msra.mxu1 %v4661_v31  ;;  %v4753_v30 = vld [vmem:[#allocation5 + $0x688] ss:$16 sps:$4 sm:$0xff]   ;;  %v4758_v31 = vld [vmem:[#allocation5 + $0x6a4] ss:$16 sps:$4 sm:$0xff]  }
 0x13a   :  { %2718 = vmatprep.subr.bf16.mxu0 %v4666_v32  ;;  %3005 = vmatprep.subr.bf16.mxu1 %v4669_v33  ;;  %v4761_v32 = vld [vmem:[#allocation5 + $0x6ac] ss:$16 sps:$4 sm:$0xff]   ;;  %v4756_v33 = vld [vmem:[#allocation5 + $0x6a0] ss:$16 sps:$4 sm:$0xff]  }
 0x13d   :  { %2719 = vmatpush1.bf16.msra.mxu0 %v4664_v34  ;;  %3006 = vmatpush1.bf16.msra.mxu1 %v4667_v35  ;;  %v4759_v34 = vld [vmem:[#allocation5 + $0x6a8] ss:$16 sps:$4 sm:$0xff]   ;;  %v4764_v35 = vld [vmem:[#allocation5 + $0x6c4] ss:$16 sps:$4 sm:$0xff]  }
 0x13e   :  { %2720 = vmatprep.subr.bf16.mxu0 %v4672_v36  ;;  %3007 = vmatprep.subr.bf16.mxu1 %v4675_v37  ;;  %v4767_v36 = vld [vmem:[#allocation5 + $0x6cc] ss:$16 sps:$4 sm:$0xff]   ;;  %v4762_v37 = vld [vmem:[#allocation5 + $0x6c0] ss:$16 sps:$4 sm:$0xff]  }
 0x141   :  { %2721 = vmatpush1.bf16.msra.mxu0 %v4670_v38  ;;  %3008 = vmatpush1.bf16.msra.mxu1 %v4673_v39  ;;  %v4765_v38 = vld [vmem:[#allocation5 + $0x6c8] ss:$16 sps:$4 sm:$0xff]   ;;  %v4770_v39 = vld [vmem:[#allocation5 + $0x6e4] ss:$16 sps:$4 sm:$0xff]  }
 0x142   :  { %2722 = vmatprep.subr.bf16.mxu0 %v4678_v40  ;;  %3009 = vmatprep.subr.bf16.mxu1 %v4681_v41  ;;  %v4773_v40 = vld [vmem:[#allocation5 + $0x6ec] ss:$16 sps:$4 sm:$0xff]   ;;  %v4768_v41 = vld [vmem:[#allocation5 + $0x6e0] ss:$16 sps:$4 sm:$0xff]  }
 0x145   :  { %2723 = vmatpush1.bf16.msra.mxu0 %v4676_v42  ;;  %3010 = vmatpush1.bf16.msra.mxu1 %v4679_v43  ;;  %v4771_v42 = vld [vmem:[#allocation5 + $0x6e8] ss:$16 sps:$4 sm:$0xff]   ;;  %v4776_v43 = vld [vmem:[#allocation5 + $0x704] ss:$16 sps:$4 sm:$0xff]  }
 0x146   :  { %2724 = vmatprep.subr.bf16.mxu0 %v4684_v44  ;;  %3011 = vmatprep.subr.bf16.mxu1 %v4687_v45  ;;  %v4779_v44 = vld [vmem:[#allocation5 + $0x70c] ss:$16 sps:$4 sm:$0xff]   ;;  %v4774_v45 = vld [vmem:[#allocation5 + $0x700] ss:$16 sps:$4 sm:$0xff]  }
 0x149   :  { %2725 = vmatpush1.bf16.msra.mxu0 %v4682_v46  ;;  %3012 = vmatpush1.bf16.msra.mxu1 %v4685_v47  ;;  %v4777_v46 = vld [vmem:[#allocation5 + $0x708] ss:$16 sps:$4 sm:$0xff]   ;;  %v4782_v47 = vld [vmem:[#allocation5 + $0x724] ss:$16 sps:$4 sm:$0xff]  }
 0x14a   :  { %2726 = vmatprep.subr.bf16.mxu0 %v4690_v48  ;;  %3013 = vmatprep.subr.bf16.mxu1 %v4693_v49  ;;  %v4785_v48 = vld [vmem:[#allocation5 + $0x72c] ss:$16 sps:$4 sm:$0xff]   ;;  %v4780_v49 = vld [vmem:[#allocation5 + $0x720] ss:$16 sps:$4 sm:$0xff]  }
 0x14d   :  { %2727 = vmatpush1.bf16.msra.mxu0 %v4688_v50  ;;  %3014 = vmatpush1.bf16.msra.mxu1 %v4691_v51  ;;  %v4783_v50 = vld [vmem:[#allocation5 + $0x728] ss:$16 sps:$4 sm:$0xff]   ;;  %v4788_v51 = vld [vmem:[#allocation5 + $0x744] ss:$16 sps:$4 sm:$0xff]  }
 0x14e   :  { %2728 = vmatprep.subr.bf16.mxu0 %v4696_v52  ;;  %3015 = vmatprep.subr.bf16.mxu1 %v4699_v53  ;;  %v4791_v52 = vld [vmem:[#allocation5 + $0x74c] ss:$16 sps:$4 sm:$0xff]   ;;  %v4786_v53 = vld [vmem:[#allocation5 + $0x740] ss:$16 sps:$4 sm:$0xff]  }
 0x151   :  { %2729 = vmatpush1.bf16.msra.mxu0 %v4694_v54  ;;  %3016 = vmatpush1.bf16.msra.mxu1 %v4697_v55  ;;  %v4789_v54 = vld [vmem:[#allocation5 + $0x748] ss:$16 sps:$4 sm:$0xff]   ;;  %v4794_v55 = vld [vmem:[#allocation5 + $0x764] ss:$16 sps:$4 sm:$0xff]  }
 0x152   :  { %2730 = vmatprep.subr.bf16.mxu0 %v4702_v56  ;;  %3017 = vmatprep.subr.bf16.mxu1 %v4705_v57  ;;  %v4797_v56 = vld [vmem:[#allocation5 + $0x76c] ss:$16 sps:$4 sm:$0xff]   ;;  %v4792_v57 = vld [vmem:[#allocation5 + $0x760] ss:$16 sps:$4 sm:$0xff]  }
 0x155   :  { %2731 = vmatpush1.bf16.msra.mxu0 %v4700_v58  ;;  %3018 = vmatpush1.bf16.msra.mxu1 %v4703_v59  ;;  %v4795_v58 = vld [vmem:[#allocation5 + $0x768] ss:$16 sps:$4 sm:$0xff]   ;;  %v4800_v59 = vld [vmem:[#allocation5 + $0x784] ss:$16 sps:$4 sm:$0xff]  }
 0x156   :  { %2732 = vmatprep.subr.bf16.mxu0 %v4708_v60  ;;  %3019 = vmatprep.subr.bf16.mxu1 %v4711_v61  ;;  %v4803_v60 = vld [vmem:[#allocation5 + $0x78c] ss:$16 sps:$4 sm:$0xff]   ;;  %v4798_v61 = vld [vmem:[#allocation5 + $0x780] ss:$16 sps:$4 sm:$0xff]  }
 0x159   :  { %2733 = vmatpush1.bf16.msra.mxu0 %v4706_v62  ;;  %3020 = vmatpush1.bf16.msra.mxu1 %v4709_v63  ;;  %v4801_v62 = vld [vmem:[#allocation5 + $0x788] ss:$16 sps:$4 sm:$0xff]   ;;  %v4806_v63 = vld [vmem:[#allocation5 + $0x7a4] ss:$16 sps:$4 sm:$0xff]  }
 0x15a   :  { %2734 = vmatprep.subr.bf16.mxu0 %v4714_v0  ;;  %3021 = vmatprep.subr.bf16.mxu1 %v4717_v1  ;;  %v4809_v0 = vld [vmem:[#allocation5 + $0x7ac] ss:$16 sps:$4 sm:$0xff]   ;;  %v4804_v1 = vld [vmem:[#allocation5 + $0x7a0] ss:$16 sps:$4 sm:$0xff]  }
 0x15d   :  { %2735 = vmatpush1.bf16.msra.mxu0 %v4712_v2  ;;  %3022 = vmatpush1.bf16.msra.mxu1 %v4715_v3  ;;  %v4807_v2 = vld [vmem:[#allocation5 + $0x7a8] ss:$16 sps:$4 sm:$0xff]   ;;  %v4812_v3 = vld [vmem:[#allocation5 + $0x7c4] ss:$16 sps:$4 sm:$0xff]  }
 0x15e   :  { %2736 = vmatprep.subr.bf16.mxu0 %v4720_v4  ;;  %3023 = vmatprep.subr.bf16.mxu1 %v4723_v5  ;;  %v4815_v4 = vld [vmem:[#allocation5 + $0x7cc] ss:$16 sps:$4 sm:$0xff]   ;;  %v4810_v5 = vld [vmem:[#allocation5 + $0x7c0] ss:$16 sps:$4 sm:$0xff]  }
 0x161   :  { %2737 = vmatpush1.bf16.msra.mxu0 %v4718_v6  ;;  %3024 = vmatpush1.bf16.msra.mxu1 %v4721_v7  ;;  %v4813_v6 = vld [vmem:[#allocation5 + $0x7c8] ss:$16 sps:$4 sm:$0xff]   ;;  %v4818_v7 = vld [vmem:[#allocation5 + $0x7e4] ss:$16 sps:$4 sm:$0xff]  }
 0x162   :  { %2747 = vmatprep.subr.bf16.mxu0 %v4728_v8  ;;  %3034 = vmatprep.subr.bf16.mxu1 %v4731_v9  ;;  %v4821_v8 = vld [vmem:[#allocation5 + $0x7ec] ss:$16 sps:$4 sm:$0xff]   ;;  %v4816_v9 = vld [vmem:[#allocation5 + $0x7e0] ss:$16 sps:$4 sm:$0xff]  }
 0x164   :  { %2739 = vmatmul.mubr.bf16.vlgmr.msra.gmra.mrb[0].mxu0 %v3799_v12  ;;  %3026 = vmatmul.mubr.bf16.vlgmr.msra.gmra.mrb[0].mxu1 %v3799_v12  ;;  %v4826_v12 = vld [vmem:[#allocation5 + $0x804] ss:$16 sps:$4 sm:$0xff]  }
 0x165   :  { %2748 = vmatpush1.bf16.msra.mxu0 %v4726_v10  ;;  %3035 = vmatpush1.bf16.msra.mxu1 %v4729_v13  ;;  %v4819_v10 = vld [vmem:[#allocation5 + $0x7e8] ss:$16 sps:$4 sm:$0xff]   ;;  %v4829_v13 = vld [vmem:[#allocation5 + $0x80c] ss:$16 sps:$4 sm:$0xff]  }
 0x166   :  { %2749 = vmatprep.subr.bf16.mxu0 %v4734_v15  ;;  %3036 = vmatprep.subr.bf16.mxu1 %v4737_v16  ;;  %v4824_v15 = vld [vmem:[#allocation5 + $0x800] ss:$16 sps:$4 sm:$0xff]   ;;  %v3801_v16 = vcombine.low %v5528_v14, %v5528_v14  ;;  %v4838_v14 = vld [vmem:[#allocation5 + $0x844] ss:$16 sps:$4 sm:$0xff]  }
 0x167   :  { %2779 = vmatprep.mubr.bf16.mxu0 %v3802_v17  ;;  %3066 = vmatprep.mubr.bf16.mxu1 %v3802_v17  ;;  %v5534_v17 = vld [vmem:[#allocation2 + $0x20] sm:$0xff] }
 0x169   :  { %2750 = vmatpush1.bf16.msra.mxu0 %v4732_v18  ;;  %3037 = vmatpush1.bf16.msra.mxu1 %v4735_v19  ;;  %v4827_v18 = vld [vmem:[#allocation5 + $0x808] ss:$16 sps:$4 sm:$0xff]   ;;  %v4832_v19 = vld [vmem:[#allocation5 + $0x824] ss:$16 sps:$4 sm:$0xff]  }
 0x16a   :  { %2751 = vmatprep.subr.bf16.mxu0 %v4740_v20  ;;  %3038 = vmatprep.subr.bf16.mxu1 %v4743_v11  ;;  %v4835_v20 = vld [vmem:[#allocation5 + $0x82c] ss:$16 sps:$4 sm:$0xff]   ;;  %v3804_v11 = vcombine.high %v5534_v17, %v5534_v17 }
 0x16d   :  { %2752 = vmatpush1.bf16.msra.mxu0 %v4738_v21  ;;  %3039 = vmatpush1.bf16.msra.mxu1 %v4741_v22  ;;  %v4830_v21 = vld [vmem:[#allocation5 + $0x820] ss:$16 sps:$4 sm:$0xff]   ;;  %v4833_v22 = vld [vmem:[#allocation5 + $0x828] ss:$16 sps:$4 sm:$0xff]  }
 0x16e   :  { %2753 = vmatprep.subr.bf16.mxu0 %v4746_v23  ;;  %3040 = vmatprep.subr.bf16.mxu1 %v4749_v24  ;;  %v4841_v23 = vld [vmem:[#allocation5 + $0x84c] ss:$16 sps:$4 sm:$0xff]   ;;  %v4836_v24 = vld [vmem:[#allocation5 + $0x840] ss:$16 sps:$4 sm:$0xff]  }
 0x171   :  { %2754 = vmatpush1.bf16.msra.mxu0 %v4744_v25  ;;  %3041 = vmatpush1.bf16.msra.mxu1 %v4747_v26  ;;  %v4839_v25 = vld [vmem:[#allocation5 + $0x848] ss:$16 sps:$4 sm:$0xff]   ;;  %v4844_v26 = vld [vmem:[#allocation5 + $0x864] ss:$16 sps:$4 sm:$0xff]  }
 0x172   :  { %2755 = vmatprep.subr.bf16.mxu0 %v4752_v27  ;;  %3042 = vmatprep.subr.bf16.mxu1 %v4755_v28  ;;  %v4847_v27 = vld [vmem:[#allocation5 + $0x86c] ss:$16 sps:$4 sm:$0xff]   ;;  %v4842_v28 = vld [vmem:[#allocation5 + $0x860] ss:$16 sps:$4 sm:$0xff]  }
 0x175   :  { %2756 = vmatpush1.bf16.msra.mxu0 %v4750_v29  ;;  %3043 = vmatpush1.bf16.msra.mxu1 %v4753_v30  ;;  %v4845_v29 = vld [vmem:[#allocation5 + $0x868] ss:$16 sps:$4 sm:$0xff]   ;;  %v4850_v30 = vld [vmem:[#allocation5 + $0x884] ss:$16 sps:$4 sm:$0xff]  }
 0x176   :  { %2757 = vmatprep.subr.bf16.mxu0 %v4758_v31  ;;  %3044 = vmatprep.subr.bf16.mxu1 %v4761_v32  ;;  %v4853_v31 = vld [vmem:[#allocation5 + $0x88c] ss:$16 sps:$4 sm:$0xff]   ;;  %v4848_v32 = vld [vmem:[#allocation5 + $0x880] ss:$16 sps:$4 sm:$0xff]  }
 0x179   :  { %2758 = vmatpush1.bf16.msra.mxu0 %v4756_v33  ;;  %3045 = vmatpush1.bf16.msra.mxu1 %v4759_v34  ;;  %v4851_v33 = vld [vmem:[#allocation5 + $0x888] ss:$16 sps:$4 sm:$0xff]   ;;  %v4856_v34 = vld [vmem:[#allocation5 + $0x8a4] ss:$16 sps:$4 sm:$0xff]  }
 0x17a   :  { %2759 = vmatprep.subr.bf16.mxu0 %v4764_v35  ;;  %3046 = vmatprep.subr.bf16.mxu1 %v4767_v36  ;;  %v4859_v35 = vld [vmem:[#allocation5 + $0x8ac] ss:$16 sps:$4 sm:$0xff]   ;;  %v4854_v36 = vld [vmem:[#allocation5 + $0x8a0] ss:$16 sps:$4 sm:$0xff]  }
 0x17d   :  { %2760 = vmatpush1.bf16.msra.mxu0 %v4762_v37  ;;  %3047 = vmatpush1.bf16.msra.mxu1 %v4765_v38  ;;  %v4857_v37 = vld [vmem:[#allocation5 + $0x8a8] ss:$16 sps:$4 sm:$0xff]   ;;  %v4862_v38 = vld [vmem:[#allocation5 + $0x8c4] ss:$16 sps:$4 sm:$0xff]  }
 0x17e   :  { %2761 = vmatprep.subr.bf16.mxu0 %v4770_v39  ;;  %3048 = vmatprep.subr.bf16.mxu1 %v4773_v40  ;;  %v4865_v39 = vld [vmem:[#allocation5 + $0x8cc] ss:$16 sps:$4 sm:$0xff]   ;;  %v4860_v40 = vld [vmem:[#allocation5 + $0x8c0] ss:$16 sps:$4 sm:$0xff]  }
 0x181   :  { %2762 = vmatpush1.bf16.msra.mxu0 %v4768_v41  ;;  %3049 = vmatpush1.bf16.msra.mxu1 %v4771_v42  ;;  %v4863_v41 = vld [vmem:[#allocation5 + $0x8c8] ss:$16 sps:$4 sm:$0xff]   ;;  %v4868_v42 = vld [vmem:[#allocation5 + $0x8e4] ss:$16 sps:$4 sm:$0xff]  }
 0x182   :  { %2763 = vmatprep.subr.bf16.mxu0 %v4776_v43  ;;  %3050 = vmatprep.subr.bf16.mxu1 %v4779_v44  ;;  %v4871_v43 = vld [vmem:[#allocation5 + $0x8ec] ss:$16 sps:$4 sm:$0xff]   ;;  %v4866_v44 = vld [vmem:[#allocation5 + $0x8e0] ss:$16 sps:$4 sm:$0xff]  }
 0x185   :  { %2764 = vmatpush1.bf16.msra.mxu0 %v4774_v45  ;;  %3051 = vmatpush1.bf16.msra.mxu1 %v4777_v46  ;;  %v4869_v45 = vld [vmem:[#allocation5 + $0x8e8] ss:$16 sps:$4 sm:$0xff]   ;;  %v4874_v46 = vld [vmem:[#allocation5 + $0x904] ss:$16 sps:$4 sm:$0xff]  }
 0x186   :  { %2765 = vmatprep.subr.bf16.mxu0 %v4782_v47  ;;  %3052 = vmatprep.subr.bf16.mxu1 %v4785_v48  ;;  %v4877_v47 = vld [vmem:[#allocation5 + $0x90c] ss:$16 sps:$4 sm:$0xff]   ;;  %v4872_v48 = vld [vmem:[#allocation5 + $0x900] ss:$16 sps:$4 sm:$0xff]  }
 0x189   :  { %2766 = vmatpush1.bf16.msra.mxu0 %v4780_v49  ;;  %3053 = vmatpush1.bf16.msra.mxu1 %v4783_v50  ;;  %v4875_v49 = vld [vmem:[#allocation5 + $0x908] ss:$16 sps:$4 sm:$0xff]   ;;  %v4880_v50 = vld [vmem:[#allocation5 + $0x924] ss:$16 sps:$4 sm:$0xff]  }
 0x18a   :  { %2767 = vmatprep.subr.bf16.mxu0 %v4788_v51  ;;  %3054 = vmatprep.subr.bf16.mxu1 %v4791_v52  ;;  %v4883_v51 = vld [vmem:[#allocation5 + $0x92c] ss:$16 sps:$4 sm:$0xff]   ;;  %v4878_v52 = vld [vmem:[#allocation5 + $0x920] ss:$16 sps:$4 sm:$0xff]  }
 0x18d   :  { %2768 = vmatpush1.bf16.msra.mxu0 %v4786_v53  ;;  %3055 = vmatpush1.bf16.msra.mxu1 %v4789_v54  ;;  %v4881_v53 = vld [vmem:[#allocation5 + $0x928] ss:$16 sps:$4 sm:$0xff]   ;;  %v4886_v54 = vld [vmem:[#allocation5 + $0x944] ss:$16 sps:$4 sm:$0xff]  }
 0x18e   :  { %2769 = vmatprep.subr.bf16.mxu0 %v4794_v55  ;;  %3056 = vmatprep.subr.bf16.mxu1 %v4797_v56  ;;  %v4889_v55 = vld [vmem:[#allocation5 + $0x94c] ss:$16 sps:$4 sm:$0xff]   ;;  %v4884_v56 = vld [vmem:[#allocation5 + $0x940] ss:$16 sps:$4 sm:$0xff]  }
 0x191   :  { %2770 = vmatpush1.bf16.msra.mxu0 %v4792_v57  ;;  %3057 = vmatpush1.bf16.msra.mxu1 %v4795_v58  ;;  %v4887_v57 = vld [vmem:[#allocation5 + $0x948] ss:$16 sps:$4 sm:$0xff]   ;;  %v4892_v58 = vld [vmem:[#allocation5 + $0x964] ss:$16 sps:$4 sm:$0xff]  }
 0x192   :  { %2771 = vmatprep.subr.bf16.mxu0 %v4800_v59  ;;  %3058 = vmatprep.subr.bf16.mxu1 %v4803_v60  ;;  %v4895_v59 = vld [vmem:[#allocation5 + $0x96c] ss:$16 sps:$4 sm:$0xff]   ;;  %v4890_v60 = vld [vmem:[#allocation5 + $0x960] ss:$16 sps:$4 sm:$0xff]  }
 0x195   :  { %2772 = vmatpush1.bf16.msra.mxu0 %v4798_v61  ;;  %3059 = vmatpush1.bf16.msra.mxu1 %v4801_v62  ;;  %v4893_v61 = vld [vmem:[#allocation5 + $0x968] ss:$16 sps:$4 sm:$0xff]   ;;  %v4898_v62 = vld [vmem:[#allocation5 + $0x984] ss:$16 sps:$4 sm:$0xff]  }
 0x196   :  { %2773 = vmatprep.subr.bf16.mxu0 %v4806_v63  ;;  %3060 = vmatprep.subr.bf16.mxu1 %v4809_v0  ;;  %v4901_v63 = vld [vmem:[#allocation5 + $0x98c] ss:$16 sps:$4 sm:$0xff]   ;;  %v4896_v0 = vld [vmem:[#allocation5 + $0x980] ss:$16 sps:$4 sm:$0xff]  }
 0x199   :  { %2774 = vmatpush1.bf16.msra.mxu0 %v4804_v1  ;;  %3061 = vmatpush1.bf16.msra.mxu1 %v4807_v2  ;;  %v4899_v1 = vld [vmem:[#allocation5 + $0x988] ss:$16 sps:$4 sm:$0xff]   ;;  %v4904_v2 = vld [vmem:[#allocation5 + $0x9a4] ss:$16 sps:$4 sm:$0xff]  }
 0x19a   :  { %2775 = vmatprep.subr.bf16.mxu0 %v4812_v3  ;;  %3062 = vmatprep.subr.bf16.mxu1 %v4815_v4  ;;  %v4907_v3 = vld [vmem:[#allocation5 + $0x9ac] ss:$16 sps:$4 sm:$0xff]   ;;  %v4902_v4 = vld [vmem:[#allocation5 + $0x9a0] ss:$16 sps:$4 sm:$0xff]  }
 0x19d   :  { %2776 = vmatpush1.bf16.msra.mxu0 %v4810_v5  ;;  %3063 = vmatpush1.bf16.msra.mxu1 %v4813_v6  ;;  %v4905_v5 = vld [vmem:[#allocation5 + $0x9a8] ss:$16 sps:$4 sm:$0xff]   ;;  %v4910_v6 = vld [vmem:[#allocation5 + $0x9c4] ss:$16 sps:$4 sm:$0xff]  }
 0x19e   :  { %2777 = vmatprep.subr.bf16.mxu0 %v4818_v7  ;;  %3064 = vmatprep.subr.bf16.mxu1 %v4821_v8  ;;  %v4913_v7 = vld [vmem:[#allocation5 + $0x9cc] ss:$16 sps:$4 sm:$0xff]   ;;  %v4908_v8 = vld [vmem:[#allocation5 + $0x9c0] ss:$16 sps:$4 sm:$0xff]  }
 0x1a1   :  { %2778 = vmatpush1.bf16.msra.mxu0 %v4816_v9  ;;  %3065 = vmatpush1.bf16.msra.mxu1 %v4819_v10  ;;  %v4911_v9 = vld [vmem:[#allocation5 + $0x9c8] ss:$16 sps:$4 sm:$0xff]   ;;  %v4916_v10 = vld [vmem:[#allocation5 + $0x9e4] ss:$16 sps:$4 sm:$0xff]  }
 0x1a2   :  { %2788 = vmatprep.subr.bf16.mxu0 %v4826_v12  ;;  %3075 = vmatprep.subr.bf16.mxu1 %v4829_v13  ;;  %v4919_v12 = vld [vmem:[#allocation5 + $0x9ec] ss:$16 sps:$4 sm:$0xff]   ;;  %v4914_v13 = vld [vmem:[#allocation5 + $0x9e0] ss:$16 sps:$4 sm:$0xff]  }
 0x1a4   :  { %2780 = vmatmul.mubr.bf16.vlgmr.msra.gmra.mrb[0].mxu0 %v3801_v16  ;;  %3067 = vmatmul.mubr.bf16.vlgmr.msra.gmra.mrb[0].mxu1 %v3801_v16  ;;  %v4924_v16 = vld [vmem:[#allocation5 + $0xa04] ss:$16 sps:$4 sm:$0xff]  }
 0x1a5   :  { %2789 = vmatpush1.bf16.msra.mxu0 %v4824_v15  ;;  %3076 = vmatpush1.bf16.msra.mxu1 %v4827_v18  ;;  %v4917_v15 = vld [vmem:[#allocation5 + $0x9e8] ss:$16 sps:$4 sm:$0xff]   ;;  %v4927_v18 = vld [vmem:[#allocation5 + $0xa0c] ss:$16 sps:$4 sm:$0xff]  }
 0x1a6   :  { %2790 = vmatprep.subr.bf16.mxu0 %v4832_v19  ;;  %3077 = vmatprep.subr.bf16.mxu1 %v4835_v20  ;;  %v3803_v19 = vcombine.low %v5534_v17, %v5534_v17  ;;  %v5540_v20 = vld [vmem:[#allocation2 + $0x28] sm:$0xff] }
 0x1a7   :  { %2820 = vmatprep.mubr.bf16.mxu0 %v3804_v11  ;;  %3107 = vmatprep.mubr.bf16.mxu1 %v3804_v11  ;;  %v4922_v11 = vld [vmem:[#allocation5 + $0xa00] ss:$16 sps:$4 sm:$0xff]   ;;  %v4936_v17 = vld [vmem:[#allocation5 + $0xa44] ss:$16 sps:$4 sm:$0xff]  }
 0x1a9   :  { %2791 = vmatpush1.bf16.msra.mxu0 %v4830_v21  ;;  %3078 = vmatpush1.bf16.msra.mxu1 %v4833_v22  ;;  %v4925_v21 = vld [vmem:[#allocation5 + $0xa08] ss:$16 sps:$4 sm:$0xff]   ;;  %v4930_v22 = vld [vmem:[#allocation5 + $0xa24] ss:$16 sps:$4 sm:$0xff]  }
 0x1aa   :  { %2792 = vmatprep.subr.bf16.mxu0 %v4838_v14  ;;  %3079 = vmatprep.subr.bf16.mxu1 %v4841_v23  ;;  %v4933_v14 = vld [vmem:[#allocation5 + $0xa2c] ss:$16 sps:$4 sm:$0xff]   ;;  %v3806_v23 = vcombine.high %v5540_v20, %v5540_v20 }
 0x1ad   :  { %2793 = vmatpush1.bf16.msra.mxu0 %v4836_v24  ;;  %3080 = vmatpush1.bf16.msra.mxu1 %v4839_v25  ;;  %v4928_v24 = vld [vmem:[#allocation5 + $0xa20] ss:$16 sps:$4 sm:$0xff]   ;;  %v4931_v25 = vld [vmem:[#allocation5 + $0xa28] ss:$16 sps:$4 sm:$0xff]  }
 0x1ae   :  { %2794 = vmatprep.subr.bf16.mxu0 %v4844_v26  ;;  %3081 = vmatprep.subr.bf16.mxu1 %v4847_v27  ;;  %v4939_v26 = vld [vmem:[#allocation5 + $0xa4c] ss:$16 sps:$4 sm:$0xff]   ;;  %v4934_v27 = vld [vmem:[#allocation5 + $0xa40] ss:$16 sps:$4 sm:$0xff]  }
 0x1b1   :  { %2795 = vmatpush1.bf16.msra.mxu0 %v4842_v28  ;;  %3082 = vmatpush1.bf16.msra.mxu1 %v4845_v29  ;;  %v4937_v28 = vld [vmem:[#allocation5 + $0xa48] ss:$16 sps:$4 sm:$0xff]   ;;  %v4942_v29 = vld [vmem:[#allocation5 + $0xa64] ss:$16 sps:$4 sm:$0xff]  }
 0x1b2   :  { %2796 = vmatprep.subr.bf16.mxu0 %v4850_v30  ;;  %3083 = vmatprep.subr.bf16.mxu1 %v4853_v31  ;;  %v4945_v30 = vld [vmem:[#allocation5 + $0xa6c] ss:$16 sps:$4 sm:$0xff]   ;;  %v4940_v31 = vld [vmem:[#allocation5 + $0xa60] ss:$16 sps:$4 sm:$0xff]  }
 0x1b5   :  { %2797 = vmatpush1.bf16.msra.mxu0 %v4848_v32  ;;  %3084 = vmatpush1.bf16.msra.mxu1 %v4851_v33  ;;  %v4943_v32 = vld [vmem:[#allocation5 + $0xa68] ss:$16 sps:$4 sm:$0xff]   ;;  %v4948_v33 = vld [vmem:[#allocation5 + $0xa84] ss:$16 sps:$4 sm:$0xff]  }
 0x1b6   :  { %2798 = vmatprep.subr.bf16.mxu0 %v4856_v34  ;;  %3085 = vmatprep.subr.bf16.mxu1 %v4859_v35  ;;  %v4951_v34 = vld [vmem:[#allocation5 + $0xa8c] ss:$16 sps:$4 sm:$0xff]   ;;  %v4946_v35 = vld [vmem:[#allocation5 + $0xa80] ss:$16 sps:$4 sm:$0xff]  }
 0x1b9   :  { %2799 = vmatpush1.bf16.msra.mxu0 %v4854_v36  ;;  %3086 = vmatpush1.bf16.msra.mxu1 %v4857_v37  ;;  %v4949_v36 = vld [vmem:[#allocation5 + $0xa88] ss:$16 sps:$4 sm:$0xff]   ;;  %v4954_v37 = vld [vmem:[#allocation5 + $0xaa4] ss:$16 sps:$4 sm:$0xff]  }
 0x1ba   :  { %2800 = vmatprep.subr.bf16.mxu0 %v4862_v38  ;;  %3087 = vmatprep.subr.bf16.mxu1 %v4865_v39  ;;  %v4957_v38 = vld [vmem:[#allocation5 + $0xaac] ss:$16 sps:$4 sm:$0xff]   ;;  %v4952_v39 = vld [vmem:[#allocation5 + $0xaa0] ss:$16 sps:$4 sm:$0xff]  }
 0x1bd   :  { %2801 = vmatpush1.bf16.msra.mxu0 %v4860_v40  ;;  %3088 = vmatpush1.bf16.msra.mxu1 %v4863_v41  ;;  %v4955_v40 = vld [vmem:[#allocation5 + $0xaa8] ss:$16 sps:$4 sm:$0xff]   ;;  %v4960_v41 = vld [vmem:[#allocation5 + $0xac4] ss:$16 sps:$4 sm:$0xff]  }
 0x1be   :  { %2802 = vmatprep.subr.bf16.mxu0 %v4868_v42  ;;  %3089 = vmatprep.subr.bf16.mxu1 %v4871_v43  ;;  %v4963_v42 = vld [vmem:[#allocation5 + $0xacc] ss:$16 sps:$4 sm:$0xff]   ;;  %v4958_v43 = vld [vmem:[#allocation5 + $0xac0] ss:$16 sps:$4 sm:$0xff]  }
 0x1c1   :  { %2803 = vmatpush1.bf16.msra.mxu0 %v4866_v44  ;;  %3090 = vmatpush1.bf16.msra.mxu1 %v4869_v45  ;;  %v4961_v44 = vld [vmem:[#allocation5 + $0xac8] ss:$16 sps:$4 sm:$0xff]   ;;  %v4966_v45 = vld [vmem:[#allocation5 + $0xae4] ss:$16 sps:$4 sm:$0xff]  }
 0x1c2   :  { %2804 = vmatprep.subr.bf16.mxu0 %v4874_v46  ;;  %3091 = vmatprep.subr.bf16.mxu1 %v4877_v47  ;;  %v4969_v46 = vld [vmem:[#allocation5 + $0xaec] ss:$16 sps:$4 sm:$0xff]   ;;  %v4964_v47 = vld [vmem:[#allocation5 + $0xae0] ss:$16 sps:$4 sm:$0xff]  }
 0x1c5   :  { %2805 = vmatpush1.bf16.msra.mxu0 %v4872_v48  ;;  %3092 = vmatpush1.bf16.msra.mxu1 %v4875_v49  ;;  %v4967_v48 = vld [vmem:[#allocation5 + $0xae8] ss:$16 sps:$4 sm:$0xff]   ;;  %v4972_v49 = vld [vmem:[#allocation5 + $0xb04] ss:$16 sps:$4 sm:$0xff]  }
 0x1c6   :  { %2806 = vmatprep.subr.bf16.mxu0 %v4880_v50  ;;  %3093 = vmatprep.subr.bf16.mxu1 %v4883_v51  ;;  %v4975_v50 = vld [vmem:[#allocation5 + $0xb0c] ss:$16 sps:$4 sm:$0xff]   ;;  %v4970_v51 = vld [vmem:[#allocation5 + $0xb00] ss:$16 sps:$4 sm:$0xff]  }
 0x1c9   :  { %2807 = vmatpush1.bf16.msra.mxu0 %v4878_v52  ;;  %3094 = vmatpush1.bf16.msra.mxu1 %v4881_v53  ;;  %v4973_v52 = vld [vmem:[#allocation5 + $0xb08] ss:$16 sps:$4 sm:$0xff]   ;;  %v4978_v53 = vld [vmem:[#allocation5 + $0xb24] ss:$16 sps:$4 sm:$0xff]  }
 0x1ca   :  { %2808 = vmatprep.subr.bf16.mxu0 %v4886_v54  ;;  %3095 = vmatprep.subr.bf16.mxu1 %v4889_v55  ;;  %v4981_v54 = vld [vmem:[#allocation5 + $0xb2c] ss:$16 sps:$4 sm:$0xff]   ;;  %v4976_v55 = vld [vmem:[#allocation5 + $0xb20] ss:$16 sps:$4 sm:$0xff]  }
 0x1cd   :  { %2809 = vmatpush1.bf16.msra.mxu0 %v4884_v56  ;;  %3096 = vmatpush1.bf16.msra.mxu1 %v4887_v57  ;;  %v4979_v56 = vld [vmem:[#allocation5 + $0xb28] ss:$16 sps:$4 sm:$0xff]   ;;  %v4984_v57 = vld [vmem:[#allocation5 + $0xb44] ss:$16 sps:$4 sm:$0xff]  }
 0x1ce   :  { %2810 = vmatprep.subr.bf16.mxu0 %v4892_v58  ;;  %3097 = vmatprep.subr.bf16.mxu1 %v4895_v59  ;;  %v4987_v58 = vld [vmem:[#allocation5 + $0xb4c] ss:$16 sps:$4 sm:$0xff]   ;;  %v4982_v59 = vld [vmem:[#allocation5 + $0xb40] ss:$16 sps:$4 sm:$0xff]  }
 0x1d1   :  { %2811 = vmatpush1.bf16.msra.mxu0 %v4890_v60  ;;  %3098 = vmatpush1.bf16.msra.mxu1 %v4893_v61  ;;  %v4985_v60 = vld [vmem:[#allocation5 + $0xb48] ss:$16 sps:$4 sm:$0xff]   ;;  %v4990_v61 = vld [vmem:[#allocation5 + $0xb64] ss:$16 sps:$4 sm:$0xff]  }
 0x1d2   :  { %2812 = vmatprep.subr.bf16.mxu0 %v4898_v62  ;;  %3099 = vmatprep.subr.bf16.mxu1 %v4901_v63  ;;  %v4993_v62 = vld [vmem:[#allocation5 + $0xb6c] ss:$16 sps:$4 sm:$0xff]   ;;  %v4988_v63 = vld [vmem:[#allocation5 + $0xb60] ss:$16 sps:$4 sm:$0xff]  }
 0x1d5   :  { %2813 = vmatpush1.bf16.msra.mxu0 %v4896_v0  ;;  %3100 = vmatpush1.bf16.msra.mxu1 %v4899_v1  ;;  %v4991_v0 = vld [vmem:[#allocation5 + $0xb68] ss:$16 sps:$4 sm:$0xff]   ;;  %v4996_v1 = vld [vmem:[#allocation5 + $0xb84] ss:$16 sps:$4 sm:$0xff]  }
 0x1d6   :  { %2814 = vmatprep.subr.bf16.mxu0 %v4904_v2  ;;  %3101 = vmatprep.subr.bf16.mxu1 %v4907_v3  ;;  %v4999_v2 = vld [vmem:[#allocation5 + $0xb8c] ss:$16 sps:$4 sm:$0xff]   ;;  %v4994_v3 = vld [vmem:[#allocation5 + $0xb80] ss:$16 sps:$4 sm:$0xff]  }
 0x1d9   :  { %2815 = vmatpush1.bf16.msra.mxu0 %v4902_v4  ;;  %3102 = vmatpush1.bf16.msra.mxu1 %v4905_v5  ;;  %v4997_v4 = vld [vmem:[#allocation5 + $0xb88] ss:$16 sps:$4 sm:$0xff]   ;;  %v5002_v5 = vld [vmem:[#allocation5 + $0xba4] ss:$16 sps:$4 sm:$0xff]  }
 0x1da   :  { %2816 = vmatprep.subr.bf16.mxu0 %v4910_v6  ;;  %3103 = vmatprep.subr.bf16.mxu1 %v4913_v7  ;;  %v5005_v6 = vld [vmem:[#allocation5 + $0xbac] ss:$16 sps:$4 sm:$0xff]   ;;  %v5000_v7 = vld [vmem:[#allocation5 + $0xba0] ss:$16 sps:$4 sm:$0xff]  }
 0x1dd   :  { %2817 = vmatpush1.bf16.msra.mxu0 %v4908_v8  ;;  %3104 = vmatpush1.bf16.msra.mxu1 %v4911_v9  ;;  %v5003_v8 = vld [vmem:[#allocation5 + $0xba8] ss:$16 sps:$4 sm:$0xff]   ;;  %v5008_v9 = vld [vmem:[#allocation5 + $0xbc4] ss:$16 sps:$4 sm:$0xff]  }
 0x1de   :  { %2818 = vmatprep.subr.bf16.mxu0 %v4916_v10  ;;  %3105 = vmatprep.subr.bf16.mxu1 %v4919_v12  ;;  %v5011_v10 = vld [vmem:[#allocation5 + $0xbcc] ss:$16 sps:$4 sm:$0xff]   ;;  %v5006_v12 = vld [vmem:[#allocation5 + $0xbc0] ss:$16 sps:$4 sm:$0xff]  }
 0x1e1   :  { %2819 = vmatpush1.bf16.msra.mxu0 %v4914_v13  ;;  %3106 = vmatpush1.bf16.msra.mxu1 %v4917_v15  ;;  %v5009_v13 = vld [vmem:[#allocation5 + $0xbc8] ss:$16 sps:$4 sm:$0xff]   ;;  %v5014_v15 = vld [vmem:[#allocation5 + $0xbe4] ss:$16 sps:$4 sm:$0xff]  }
 0x1e2   :  { %2829 = vmatprep.subr.bf16.mxu0 %v4924_v16  ;;  %3116 = vmatprep.subr.bf16.mxu1 %v4927_v18  ;;  %v5017_v16 = vld [vmem:[#allocation5 + $0xbec] ss:$16 sps:$4 sm:$0xff]   ;;  %v5012_v18 = vld [vmem:[#allocation5 + $0xbe0] ss:$16 sps:$4 sm:$0xff]  }
 0x1e4   :  { %2821 = vmatmul.mubr.bf16.vlgmr.msra.gmra.mrb[0].mxu0 %v3803_v19  ;;  %3108 = vmatmul.mubr.bf16.vlgmr.msra.gmra.mrb[0].mxu1 %v3803_v19  ;;  %v5015_v19 = vld [vmem:[#allocation5 + $0xbe8] ss:$16 sps:$4 sm:$0xff]  }
 0x1e5   :  { %2830 = vmatpush1.bf16.msra.mxu0 %v4922_v11  ;;  %3117 = vmatpush1.bf16.msra.mxu1 %v4925_v21  ;;  %v5022_v11 = vld [vmem:[#allocation5 + $0xc04] ss:$16 sps:$4 sm:$0xff]   ;;  %v5025_v21 = vld [vmem:[#allocation5 + $0xc0c] ss:$16 sps:$4 sm:$0xff]  }
 0x1e6   :  { %2831 = vmatprep.subr.bf16.mxu0 %v4930_v22  ;;  %3118 = vmatprep.subr.bf16.mxu1 %v4933_v14  ;;  %v3805_v22 = vcombine.low %v5540_v20, %v5540_v20  ;;  %v5020_v14 = vld [vmem:[#allocation5 + $0xc00] ss:$16 sps:$4 sm:$0xff]  }
 0x1e7   :  { %2861 = vmatprep.mubr.bf16.mxu0 %v3806_v23  ;;  %3148 = vmatprep.mubr.bf16.mxu1 %v3806_v23  ;;  %v5023_v23 = vld [vmem:[#allocation5 + $0xc08] ss:$16 sps:$4 sm:$0xff]   ;;  %v5032_v20 = vld [vmem:[#allocation5 + $0xc40] ss:$16 sps:$4 sm:$0xff]  }
 0x1e9   :  { %2832 = vmatpush1.bf16.msra.mxu0 %v4928_v24  ;;  %3119 = vmatpush1.bf16.msra.mxu1 %v4931_v25  ;;  %v5028_v24 = vld [vmem:[#allocation5 + $0xc24] ss:$16 sps:$4 sm:$0xff]   ;;  %v5031_v25 = vld [vmem:[#allocation5 + $0xc2c] ss:$16 sps:$4 sm:$0xff]  }
 0x1ea   :  { %2833 = vmatprep.subr.bf16.mxu0 %v4936_v17  ;;  %3120 = vmatprep.subr.bf16.mxu1 %v4939_v26  ;;  %v5026_v17 = vld [vmem:[#allocation5 + $0xc20] ss:$16 sps:$4 sm:$0xff]   ;;  %v5029_v26 = vld [vmem:[#allocation5 + $0xc28] ss:$16 sps:$4 sm:$0xff]  }
 0x1ed   :  { %2834 = vmatpush1.bf16.msra.mxu0 %v4934_v27  ;;  %3121 = vmatpush1.bf16.msra.mxu1 %v4937_v28  ;;  %v5034_v27 = vld [vmem:[#allocation5 + $0xc44] ss:$16 sps:$4 sm:$0xff]   ;;  %v5037_v28 = vld [vmem:[#allocation5 + $0xc4c] ss:$16 sps:$4 sm:$0xff]  }
 0x1ee   :  { %2835 = vmatprep.subr.bf16.mxu0 %v4942_v29  ;;  %3122 = vmatprep.subr.bf16.mxu1 %v4945_v30  ;;  %v5338_v29 = vmov 0   ;;  %v5035_v30 = vld [vmem:[#allocation5 + $0xc48] ss:$16 sps:$4 sm:$0xff]  }
 0x1f1   :  { %2836 = vmatpush1.bf16.msra.mxu0 %v4940_v31  ;;  %3123 = vmatpush1.bf16.msra.mxu1 %v4943_v32  ;;  %v5040_v31 = vld [vmem:[#allocation5 + $0xc64] ss:$16 sps:$4 sm:$0xff]   ;;  %v5043_v32 = vld [vmem:[#allocation5 + $0xc6c] ss:$16 sps:$4 sm:$0xff]  }
 0x1f2   :  { %2837 = vmatprep.subr.bf16.mxu0 %v4948_v33  ;;  %3124 = vmatprep.subr.bf16.mxu1 %v4951_v34  ;;  %v5038_v33 = vld [vmem:[#allocation5 + $0xc60] ss:$16 sps:$4 sm:$0xff]   ;;  %v5041_v34 = vld [vmem:[#allocation5 + $0xc68] ss:$16 sps:$4 sm:$0xff]  }
 0x1f5   :  { %2838 = vmatpush1.bf16.msra.mxu0 %v4946_v35  ;;  %3125 = vmatpush1.bf16.msra.mxu1 %v4949_v36  ;;  %v5045_v35 = vld [vmem:[#allocation8 + $0x40] sm:$0xff]  }
 0x1f6   :  { %2839 = vmatprep.subr.bf16.mxu0 %v4954_v37  ;;  %3126 = vmatprep.subr.bf16.mxu1 %v4957_v38  ;;  %v5046_v36 = vld [vmem:[#allocation8 + $0xc0] sm:$0xff]   ;;  %v5044_v37 = vld [vmem:[#allocation2 + $0x30] ss:$0 sps:$4 sm:$0xff]  }
 0x1f7   :  { %v5047_v38 = vld [vmem:[#allocation8] sm:$0xff]  }
 0x1f9   :  { %2840 = vmatpush1.bf16.msra.mxu0 %v4952_v39  ;;  %3127 = vmatpush1.bf16.msra.mxu1 %v4955_v40  ;;  %v5048_v39 = vld [vmem:[#allocation8 + $0x80] sm:$0xff]   ;;  %v5049_v40 = vld [vmem:[#allocation8 + $0x48] sm:$0xff]  }
 0x1fa   :  { %2841 = vmatprep.subr.bf16.mxu0 %v4960_v41  ;;  %3128 = vmatprep.subr.bf16.mxu1 %v4963_v42  ;;  %v5050_v41 = vld [vmem:[#allocation8 + $0xc8] sm:$0xff]  }
 0x1fb   :  { %v5051_v42 = vld [vmem:[#allocation8 + $0x8] sm:$0xff]  }
 0x1fd   :  { %2842 = vmatpush1.bf16.msra.mxu0 %v4958_v43  ;;  %3129 = vmatpush1.bf16.msra.mxu1 %v4961_v44  ;;  %v5052_v43 = vld [vmem:[#allocation8 + $0x88] sm:$0xff]   ;;  %v5053_v44 = vld [vmem:[#allocation8 + $0x50] sm:$0xff]  }
 0x1fe   :  { %2843 = vmatprep.subr.bf16.mxu0 %v4966_v45  ;;  %3130 = vmatprep.subr.bf16.mxu1 %v4969_v46  ;;  %v5054_v45 = vld [vmem:[#allocation8 + $0xd0] sm:$0xff]  }
 0x1ff   :  { %v5055_v46 = vld [vmem:[#allocation8 + $0x10] sm:$0xff]  }
 0x201   :  { %2844 = vmatpush1.bf16.msra.mxu0 %v4964_v47  ;;  %3131 = vmatpush1.bf16.msra.mxu1 %v4967_v48  ;;  %v5056_v47 = vld [vmem:[#allocation8 + $0x90] sm:$0xff]   ;;  %v5057_v48 = vld [vmem:[#allocation8 + $0x58] sm:$0xff]  }
 0x202   :  { %2845 = vmatprep.subr.bf16.mxu0 %v4972_v49  ;;  %3132 = vmatprep.subr.bf16.mxu1 %v4975_v50  ;;  %v5058_v49 = vld [vmem:[#allocation8 + $0xd8] sm:$0xff]  }
 0x203   :  { %v5059_v50 = vld [vmem:[#allocation8 + $0x18] sm:$0xff]  }
 0x205   :  { %2846 = vmatpush1.bf16.msra.mxu0 %v4970_v51  ;;  %3133 = vmatpush1.bf16.msra.mxu1 %v4973_v52  ;;  %v5060_v51 = vld [vmem:[#allocation8 + $0x98] sm:$0xff]   ;;  %v5061_v52 = vld [vmem:[#allocation8 + $0x60] sm:$0xff]  }
 0x206   :  { %2847 = vmatprep.subr.bf16.mxu0 %v4978_v53  ;;  %3134 = vmatprep.subr.bf16.mxu1 %v4981_v54  ;;  %v5062_v53 = vld [vmem:[#allocation8 + $0xe0] sm:$0xff]  }
 0x207   :  { %v5063_v54 = vld [vmem:[#allocation8 + $0x20] sm:$0xff]  }
 0x209   :  { %2848 = vmatpush1.bf16.msra.mxu0 %v4976_v55  ;;  %3135 = vmatpush1.bf16.msra.mxu1 %v4979_v56  ;;  %v5064_v55 = vld [vmem:[#allocation8 + $0xa0] sm:$0xff]   ;;  %v5065_v56 = vld [vmem:[#allocation8 + $0x68] sm:$0xff]  }
 0x20a   :  { %2849 = vmatprep.subr.bf16.mxu0 %v4984_v57  ;;  %3136 = vmatprep.subr.bf16.mxu1 %v4987_v58  ;;  %v5066_v57 = vld [vmem:[#allocation8 + $0xe8] sm:$0xff]  }
 0x20b   :  { %v5067_v58 = vld [vmem:[#allocation8 + $0x28] sm:$0xff]  }
 0x20d   :  { %2850 = vmatpush1.bf16.msra.mxu0 %v4982_v59  ;;  %3137 = vmatpush1.bf16.msra.mxu1 %v4985_v60  ;;  %v5068_v59 = vld [vmem:[#allocation8 + $0xa8] sm:$0xff]   ;;  %v5069_v60 = vld [vmem:[#allocation8 + $0x70] sm:$0xff]  }
 0x20e   :  { %2851 = vmatprep.subr.bf16.mxu0 %v4990_v61  ;;  %3138 = vmatprep.subr.bf16.mxu1 %v4993_v62  ;;  %v5070_v61 = vld [vmem:[#allocation8 + $0xf0] sm:$0xff]  }
 0x20f   :  { %v5071_v62 = vld [vmem:[#allocation8 + $0x30] sm:$0xff]  }
 0x211   :  { %2852 = vmatpush1.bf16.msra.mxu0 %v4988_v63  ;;  %3139 = vmatpush1.bf16.msra.mxu1 %v4991_v0  ;;  %v5072_v63 = vld [vmem:[#allocation8 + $0xb0] sm:$0xff]   ;;  %v5073_v0 = vld [vmem:[#allocation8 + $0x78] sm:$0xff]  }
 0x212   :  { %2853 = vmatprep.subr.bf16.mxu0 %v4996_v1  ;;  %3140 = vmatprep.subr.bf16.mxu1 %v4999_v2  ;;  %v5074_v1 = vld [vmem:[#allocation8 + $0xf8] sm:$0xff]  }
 0x213   :  { %v5075_v2 = vld [vmem:[#allocation8 + $0x38] sm:$0xff]  }
 0x215   :  { %2854 = vmatpush1.bf16.msra.mxu0 %v4994_v3  ;;  %3141 = vmatpush1.bf16.msra.mxu1 %v4997_v4  ;;  %v5076_v3 = vld [vmem:[#allocation8 + $0xb8] sm:$0xff]   ;;  %v5339_v4 = vmov 0.0  }
 0x216   :  { %2855 = vmatprep.subr.bf16.mxu0 %v5002_v5  ;;  %3142 = vmatprep.subr.bf16.mxu1 %v5005_v6  ;;  %v555_v5 = vlaneseq }
 0x218   :  { %v556_v6 = vshrl.u32 %v555_v5, 7 }
 0x219   :  { %2856 = vmatpush1.bf16.msra.mxu0 %v5000_v7  ;;  %3143 = vmatpush1.bf16.msra.mxu1 %v5003_v8 }
 0x21a   :  { %2857 = vmatprep.subr.bf16.mxu0 %v5008_v9  ;;  %3144 = vmatprep.subr.bf16.mxu1 %v5011_v10  ;;  %v557_v7 = vsub.s32 0, %v556_v6  ;;  %v565_v8 = vsub.s32 2, %v556_v6  ;;  %v553_v9 = vld [vmem:[#allocation7] sm:$0xf]  ;;  %v561_v10 = vsub.s32 1, %v556_v6 }
 0x21d   :  { %2858 = vmatpush1.bf16.msra.mxu0 %v5006_v12  ;;  %3145 = vmatpush1.bf16.msra.mxu1 %v5009_v13  ;;  %v569_v12 = vsub.s32 3, %v556_v6  ;;  %v558_v13 = vrot.slane %v553_v9, %v557_v7 }
 0x21e   :  { %2859 = vmatprep.subr.bf16.mxu0 %v5014_v15  ;;  %3146 = vmatprep.subr.bf16.mxu1 %v5017_v16  ;;  %v566_v15 = vrot.slane %v553_v9, %v565_v8  ;;  %v562_v16 = vrot.slane %v553_v9, %v561_v10 }
 0x221   :  { %2860 = vmatpush1.bf16.msra.mxu0 %v5012_v18  ;;  %3147 = vmatpush1.bf16.msra.mxu1 %v5015_v19  ;;  %v570_v18 = vrot.slane %v553_v9, %v569_v12 }
 0x222   :  { %2870 = vmatprep.subr.bf16.mxu0 %v5022_v11  ;;  %3157 = vmatprep.subr.bf16.mxu1 %v5025_v21 }
 0x224   :  { %2862 = vmatmul.mubr.bf16.vlgmr.msra.gmra.mrb[0].mxu0 %v3805_v22  ;;  %3149 = vmatmul.mubr.bf16.vlgmr.msra.gmra.mrb[0].mxu1 %v3805_v22 }
 0x225   :  { %2871 = vmatpush1.bf16.msra.mxu0 %v5020_v14  ;;  %3158 = vmatpush1.bf16.msra.mxu1 %v5023_v23 }
 0x226   :  { %2872 = vmatprep.subr.bf16.mxu0 %v5028_v24  ;;  %3159 = vmatprep.subr.bf16.mxu1 %v5031_v25 }
 0x227   :  { %2902 = vmatprep.mubr.bf16.mxu0 %v5338_v29  ;;  %3189 = vmatprep.mubr.bf16.mxu1 %v5338_v29 }
 0x229   :  { %2873 = vmatpush1.bf16.msra.mxu0 %v5026_v17  ;;  %3160 = vmatpush1.bf16.msra.mxu1 %v5029_v26 }
 0x22a   :  { %2874 = vmatprep.subr.bf16.mxu0 %v5034_v27  ;;  %3161 = vmatprep.subr.bf16.mxu1 %v5037_v28 }
 0x22d   :  { %2875 = vmatpush1.bf16.msra.mxu0 %v5032_v20  ;;  %3162 = vmatpush1.bf16.msra.mxu1 %v5035_v30 }
 0x22e   :  { %2876 = vmatprep.subr.bf16.mxu0 %v5040_v31  ;;  %3163 = vmatprep.subr.bf16.mxu1 %v5043_v32 }
 0x231   :  { %2877 = vmatpush1.bf16.msra.mxu0 %v5038_v33  ;;  %3164 = vmatpush1.bf16.msra.mxu1 %v5041_v34  ;;  %v5077_v34 = vld [vmem:[#allocation11] sm:$0xff]  }
 0x232   :  { %4261 = vmatprep.subr.bf16.mxu0 %v5045_v35  ;;  %4283 = vmatprep.subr.bf16.mxu1 %v5046_v36 }
 0x234   :  { %4208 = vmatmul.mubr.msk.bf16.vlgmr.msra.gmra.mrb[0].mxu0 %vm2620_vm0, %v5044_v37  ;;  %4209 = vmatmul.mubr.msk.bf16.vlgmr.msra.gmra.mrb[0].mxu1 %vm2620_vm0, %v5044_v37  ;;  %v5078_v37 = vld [vmem:[#allocation11 + $0x8] sm:$0xff]  }
 0x235   :  { %4262 = vmatpush3.bf16.msra.mxu0 %v5047_v38  ;;  %4284 = vmatpush3.bf16.msra.mxu1 %v5048_v39  ;;  %v5079_v38 = vld [vmem:[#allocation11 + $0x10] sm:$0xff]   ;;  %v5080_v39 = vld [vmem:[#allocation11 + $0x18] sm:$0xff]  }
 0x236   :  { %4263 = vmatprep.subr.bf16.mxu0 %v5049_v40  ;;  %4285 = vmatprep.subr.bf16.mxu1 %v5050_v41  ;;  %v5081_v40 = vld [vmem:[#allocation11 + $0x20] sm:$0xff]   ;;  %v5082_v41 = vld [vmem:[#allocation11 + $0x28] sm:$0xff]  }
 0x239   :  { %4264 = vmatpush3.bf16.msra.mxu0 %v5051_v42  ;;  %4286 = vmatpush3.bf16.msra.mxu1 %v5052_v43  ;;  %v5083_v42 = vld [vmem:[#allocation11 + $0x30] sm:$0xff]   ;;  %v5084_v43 = vld [vmem:[#allocation11 + $0x38] sm:$0xff]  }
 0x23a   :  { %4265 = vmatprep.subr.bf16.mxu0 %v5053_v44  ;;  %4287 = vmatprep.subr.bf16.mxu1 %v5054_v45  ;;  %v5085_v44 = vld [vmem:[#allocation14] sm:$0xff]   ;;  %v5086_v45 = vld [vmem:[#allocation14 + $0x8] sm:$0xff]  }
 0x23d   :  { %4266 = vmatpush3.bf16.msra.mxu0 %v5055_v46  ;;  %4288 = vmatpush3.bf16.msra.mxu1 %v5056_v47  ;;  %v5087_v46 = vld [vmem:[#allocation14 + $0x10] sm:$0xff]   ;;  %v5088_v47 = vld [vmem:[#allocation14 + $0x18] sm:$0xff]  }
 0x23e   :  { %4267 = vmatprep.subr.bf16.mxu0 %v5057_v48  ;;  %4289 = vmatprep.subr.bf16.mxu1 %v5058_v49  ;;  %v5089_v48 = vld [vmem:[#allocation14 + $0x20] sm:$0xff]   ;;  %v5090_v49 = vld [vmem:[#allocation14 + $0x28] sm:$0xff]  }
 0x241   :  { %4268 = vmatpush3.bf16.msra.mxu0 %v5059_v50  ;;  %4290 = vmatpush3.bf16.msra.mxu1 %v5060_v51 }
 0x242   :  { %4269 = vmatprep.subr.bf16.mxu0 %v5061_v52  ;;  %4291 = vmatprep.subr.bf16.mxu1 %v5062_v53  ;;  %v4210_v52 = vld [vmem:[#allocation10] ss:$0 sm:$0xff] }
 0x245   :  { %4270 = vmatpush3.bf16.msra.mxu0 %v5063_v54  ;;  %4292 = vmatpush3.bf16.msra.mxu1 %v5064_v55 }
 0x246   :  { %4271 = vmatprep.subr.bf16.mxu0 %v5065_v56  ;;  %4293 = vmatprep.subr.bf16.mxu1 %v5066_v57 }
 0x249   :  { %4272 = vmatpush3.bf16.msra.mxu0 %v5067_v58  ;;  %4294 = vmatpush3.bf16.msra.mxu1 %v5068_v59 }
 0x24a   :  { %4273 = vmatprep.subr.bf16.mxu0 %v5069_v60  ;;  %4295 = vmatprep.subr.bf16.mxu1 %v5070_v61 }
 0x24d   :  { %4274 = vmatpush3.bf16.msra.mxu0 %v5071_v62  ;;  %4296 = vmatpush3.bf16.msra.mxu1 %v5072_v63 }
 0x24e   :  { %4275 = vmatprep.subr.bf16.mxu0 %v5073_v0  ;;  %4297 = vmatprep.subr.bf16.mxu1 %v5074_v1  ;;  %v5091_v1 = vld [vmem:[#allocation14 + $0x30] sm:$0xff]  }
 0x251   :  { %4276 = vmatpush3.bf16.msra.mxu0 %v5075_v2  ;;  %4298 = vmatpush3.bf16.msra.mxu1 %v5076_v3  ;;  %v5092_v2 = vld [vmem:[#allocation14 + $0x38] sm:$0xff]  }
 0x252   :  { %4323 = vmatprep.subr.bf16.mxu0 %v5339_v4  ;;  %4343 = vmatprep.subr.bf16.mxu1 %v5339_v4  ;;  %v4243_v3 = vld [vmem:[#allocation13] ss:$0 sm:$0xff] }
 0x307   :  { %v2904_v19 = vpop.f32.mrb[0].mxu0  ;;  %v3191_v11 = vpop.f32.mrb[0].mxu1 }
 0x308   :  { %v4363_v21 = vadd.f32 %v2904_v19, %v558_v13  ;;  %v4365_v22 = vadd.f32 %v3191_v11, %v566_v15  ;;  %v2906_v14 = vpop.f32.mrb[1].mxu0  ;;  %v3193_v23 = vpop.f32.mrb[1].mxu1  ;;  %v4252_v13 = vld [vmem:[#allocation16] ss:$0 sm:$0xff] }
 0x309   :  { %v4364_v24 = vadd.f32 %v2906_v14, %v562_v16  ;;  %v4366_v25 = vadd.f32 %v3193_v23, %v570_v18  ;;  %v2908_v17 = vpop.f32.mrb[2].mxu0  ;;  %v3195_v26 = vpop.f32.mrb[2].mxu1 }
 0x30a   :  { %v3198_v27 = vmax.f32 %v4363_v21, 0.0  ;;  %v3200_v28 = vmax.f32 %v4365_v22, 0.0  ;;  %v2909_v29 = vpop.f32.mrb[3].mxu0  ;;  %v3196_v20 = vpop.f32.mrb[3].mxu1 }
 0x30b   :  { %v3199_v30 = vmax.f32 %v4364_v24, 0.0  ;;  %v3201_v31 = vmax.f32 %v4366_v25, 0.0 }
 0x30c   :  { %v3202_v35 = vpack.c.bf16 %v3198_v27, %v3198_v27  ;;  %v3204_v36 = vpack.c.bf16 %v3200_v28, %v3200_v28 }
 0x30d   :  { %v3203_v32 = vpack.c.bf16 %v3199_v30, %v3199_v30  ;;  %v3205_v33 = vpack.c.bf16 %v3201_v31, %v3201_v31 }
 0x30f   :  { %3501 = vmatprep.mubr.bf16.mxu0 %v3203_v32  ;;  %3541 = vmatprep.mubr.bf16.mxu1 %v3205_v33 }
 0x310   :  { %3502 = vmatmul.mubr.bf16.vlgmr.msra.gmra.mrb[4].mxu0 %v3202_v35  ;;  %3542 = vmatmul.mubr.bf16.vlgmr.msra.gmra.mrb[4].mxu1 %v3204_v36 }
 0x311   :  { %4324 = vmatpush3.bf16.msra.mxu0 %v5077_v34  ;;  %4339 = vmatprep.mubr.msk.bf16.mxu0 %vm5340_vm1, %v5339_v4 }
 0x312   :  { %4325 = vmatprep.subr.bf16.mxu0 %v5339_v4  ;;  %4359 = vmatprep.mubr.msk.bf16.mxu1 %vm5340_vm1, %v5339_v4 }
 0x313   :  { %4344 = vmatpush3.bf16.msra.mxu1 %v5085_v44 }
 0x314   :  { %4345 = vmatprep.subr.bf16.mxu1 %v5339_v4 }
 0x315   :  { %4326 = vmatpush3.bf16.msra.mxu0 %v5078_v37 }
 0x316   :  { %4327 = vmatprep.subr.bf16.mxu0 %v5339_v4 }
 0x317   :  { %4346 = vmatpush3.bf16.msra.mxu1 %v5086_v45 }
 0x318   :  { %4347 = vmatprep.subr.bf16.mxu1 %v5339_v4 }
 0x319   :  { %4328 = vmatpush3.bf16.msra.mxu0 %v5079_v38 }
 0x31a   :  { %4329 = vmatprep.subr.bf16.mxu0 %v5339_v4 }
 0x31b   :  { %4348 = vmatpush3.bf16.msra.mxu1 %v5087_v46 }
 0x31c   :  { %4349 = vmatprep.subr.bf16.mxu1 %v5339_v4 }
 0x31d   :  { %4330 = vmatpush3.bf16.msra.mxu0 %v5080_v39 }
 0x31e   :  { %4331 = vmatprep.subr.bf16.mxu0 %v5339_v4 }
 0x31f   :  { %4350 = vmatpush3.bf16.msra.mxu1 %v5088_v47 }
 0x320   :  { %4351 = vmatprep.subr.bf16.mxu1 %v5339_v4 }
 0x321   :  { %4332 = vmatpush3.bf16.msra.mxu0 %v5081_v40 }
 0x322   :  { %4333 = vmatprep.subr.bf16.mxu0 %v5339_v4 }
 0x323   :  { %4352 = vmatpush3.bf16.msra.mxu1 %v5089_v48 }
 0x324   :  { %4353 = vmatprep.subr.bf16.mxu1 %v5339_v4 }
 0x325   :  { %4334 = vmatpush3.bf16.msra.mxu0 %v5082_v41 }
 0x326   :  { %4335 = vmatprep.subr.bf16.mxu0 %v5339_v4 }
 0x327   :  { %4354 = vmatpush3.bf16.msra.mxu1 %v5090_v49 }
 0x328   :  { %4355 = vmatprep.subr.bf16.mxu1 %v5339_v4 }
 0x329   :  { %4336 = vmatpush3.bf16.msra.mxu0 %v5083_v42 }
 0x32a   :  { %4337 = vmatprep.subr.bf16.mxu0 %v5339_v4 }
 0x32b   :  { %4356 = vmatpush3.bf16.msra.mxu1 %v5091_v1 }
 0x32c   :  { %4357 = vmatprep.subr.bf16.mxu1 %v5339_v4 }
 0x32d   :  { %4338 = vmatpush3.bf16.msra.mxu0 %v5084_v43 }
 0x32f   :  { %4358 = vmatpush3.bf16.msra.mxu1 %v5092_v2 }
 0x3e3   :  { %v4277_v50 = vpop.f32.mrb[4].mxu0  ;;  %v4299_v51 = vpop.f32.mrb[4].mxu1 }
 0x3e4   :  { %v4278_v53 = vpop.f32.mrb[5].mxu0  ;;  %v4300_v54 = vpop.f32.mrb[5].mxu1 }
 0x3e5   :  { %v4279_v55 = vadd.f32 %v4278_v53, %v4277_v50  ;;  %v4301_v56 = vadd.f32 %v4300_v54, %v4299_v51  ;;  %v4280_v57 = vpop.f32.mrb[6].mxu0  ;;  %v4302_v58 = vpop.f32.mrb[6].mxu1 }
 0x3e6   :  { %v4281_v59 = vpop.f32.mrb[7].mxu0  ;;  %v4303_v60 = vpop.f32.mrb[7].mxu1 }
 0x3e7   :  { %v3504_v61 = vadd.f32 %v4279_v55, %v4210_v52 }
 0x3e9   :  { %v3544_v62 = vadd.f32 %v4301_v56, %v3504_v61 }
 0x3eb   :  { %v3549_v63 = vmax.f32 %v3544_v62, 0.0 }
 0x3ed   :  { %v3550_v0 = vpack.c.bf16 %v3549_v63, %v3549_v63 }
 0x3ef   :  { %4340 = vmatmul.mubr.bf16.vlgmr.msra.gmra.mrb[8].mxu0 %v3550_v0 }
 0x4c2   :  { %v3656_v5 = vpop.f32.mrb[8].mxu0 }
 0x4c3   :  { %v3657_v6 = vadd.f32 %v4243_v3, %v3656_v5  ;;  %v4341_v7 = vpop.f32.mrb[9].mxu0 }
 0x4c4   :  { %v3659_v8 = vpop.f32.mrb[10].mxu0 }
 0x4c5   :  { %v3662_v9 = vmax.f32 %v3657_v6, 0.0  ;;  %v4342_v10 = vpop.f32.mrb[11].mxu0 }
 0x4c7   :  { %v3663_v12 = vpack.c.bf16 %v3662_v9, %v3662_v9 }
 0x4c9   :  { %4360 = vmatmul.mubr.bf16.vlgmr.msra.gmra.mrb[8].mxu1 %v3663_v12 }
 0x59c   :  { %v3769_v15 = vpop.f32.mrb[8].mxu1 }
 0x59d   :  { %v3770_v16 = vadd.f32 %v4252_v13, %v3769_v15  ;;  %v4361_v18 = vpop.f32.mrb[9].mxu1 }
 0x59e   :  { %v3772_v19 = vpop.f32.mrb[10].mxu1 }
 0x59f   :  { %3775 = vst [vmem:[#allocation17] sm:$0xff] %v3770_v16  ;;  %v4362_v4 = vpop.f32.mrb[11].mxu1 }
 0x5a0   :  { %5302 = shalt.err (!%p5299_p6)
}
 0x5a1   :  { %s5303_s7 = scalar_lea.hbm %s5585_s9, 128 }
 0x5a2   :  { %p5304_p7 = scmp.ne.s32.totalorder %s5585_s9, %s5303_s7  ;;  %p5307_p8 = scmp.lt.u32.totalorder %s5303_s7, %s5585_s9 }
 0x5a4   :  { %p5309_p9 = pnand %p5307_p8, %p5304_p7 }
 0x5a6   :  { %5312 = shalt.err (!%p5309_p9)
}
 0x5a7   :  { %3785 = dma.vmem_to_hbm [thread:$0]  %s3783_s24, 128, %s5585_s9, [#allocation4]  }
 0x5a8   :  { %5323 = dma.done.wait [#allocation4], 128  }
 0x5a9   :  { %5324 = vsyncadd [#allocation4], 4294967168 }
 0x5aa   :  { %3789 = vsyncpa [#allocation3], 1 }
 0x5ab   :  { %3790 = vsyncpa [#allocation6], 1 }
 0x5ac   :  { %3791 = vsyncpa [#allocation9], 1 }
 0x5ad   :  { %3792 = vsyncpa [#allocation12], 1 }
 0x5ae   :  { %3793 = vsyncpa [#allocation15], 1 }
 0x5af   :  { %3794 = vsyncpa [#allocation4], 1 }

</bundles_post_ra>
